<compile_context>
chip_gen: v7x
topology: tpu7x:2x2x1
jax: 0.10.0
libtpu: 0.0.40
codegen_flags: <defaults>
</compile_context>

<pallas_src>
import functools

import jax
import jax.numpy as jnp
from jax import lax
from jax.experimental import pallas as pl
from jax.experimental.pallas import tpu as pltpu


# ----------------------------- in-kernel helpers -----------------------------

def _layernorm(x, w, b, eps=1e-5):
    # PyTorch LayerNorm: biased variance, eps inside rsqrt.
    mu = jnp.mean(x, axis=-1, keepdims=True)
    xc = x - mu
    var = jnp.mean(xc * xc, axis=-1, keepdims=True)
    return xc * lax.rsqrt(var + eps) * w + b


# --------------------------------- kernel ------------------------------------

def transformer_kernel(compute_dtype,
                       x_ref,                    # (S, Din)        f32
                       emb_w_ref, emb_b_ref,     # (Din, E) cd, (1, E) f32
                       wq_ref, bq_ref,           # (H, E, dh) cd, (H, 1, dh) f32
                       wk_ref, bk_ref,
                       wv_ref, bv_ref,
                       wo_ref, bo_ref,           # (H, dh, E) cd, (1, E) f32
                       n1w_ref, n1b_ref,         # (1, E) f32
                       w1_ref, b1_ref,           # (E, Dff) cd, (1, Dff) f32
                       w2_ref, b2_ref,           # (Dff, E) cd, (1, E) f32
                       n2w_ref, n2b_ref,         # (1, E) f32
                       fcw_ref, fcb_ref,         # (E, O) cd, (1, O) f32
                       out_ref,                  # (1, O) f32
                       h_ref):                   # scratch (S, E) f32 (carried over layers)
    cd = compute_dtype
    layer = pl.program_id(1)
    H, _, dh = wq_ref.shape
    S, E = h_ref.shape
    scale = 1.0 / float(dh) ** 0.5

    # ---- prologue (layer 0 of this batch element): token embedding ----
    @pl.when(layer == 0)
    def _():
        x = x_ref[...].astype(cd)
        h_ref[...] = (jnp.dot(x, emb_w_ref[...],
                              preferred_element_type=jnp.float32)
                      + emb_b_ref[...])

    h = h_ref[...]                                   # residual stream, f32 (S, E)
    hl = h.astype(cd)

    # ---- multi-head self-attention (heads batched as a dot_general batch dim) ----
    hb = jnp.broadcast_to(hl, (H, S, E))             # (H, S, E) cd
    dn_ce = (((2,), (1,)), ((0,), (0,)))             # contract lhs[-1] with rhs[-2], batch H
    dn_qk = (((2,), (2,)), ((0,), (0,)))             # contract dh of q and k, batch H

    q = lax.dot_general(hb, wq_ref[...], dn_ce,
                        preferred_element_type=jnp.float32) + bq_ref[...]   # (H, S, dh)
    k = lax.dot_general(hb, wk_ref[...], dn_ce,
                        preferred_element_type=jnp.float32) + bk_ref[...]
    v = lax.dot_general(hb, wv_ref[...], dn_ce,
                        preferred_element_type=jnp.float32) + bv_ref[...]

    sc = lax.dot_general(q.astype(cd), k.astype(cd), dn_qk,
                         preferred_element_type=jnp.float32) * scale        # (H, S, S) f32
    m = jnp.max(sc, axis=-1, keepdims=True)
    e = jnp.exp(sc - m)
    p = e * pl.reciprocal(jnp.sum(e, axis=-1, keepdims=True), approx=True)  # softmax, f32

    o = lax.dot_general(p.astype(cd), v.astype(cd), dn_ce,
                        preferred_element_type=jnp.float32)                 # (H, S, dh)

    # output projection per head + reduce over heads (replaces concat + (E,E) matmul)
    proj = lax.dot_general(o.astype(cd), wo_ref[...], dn_ce,
                           preferred_element_type=jnp.float32)              # (H, S, E)
    attn = jnp.sum(proj, axis=0) + bo_ref[...]                              # (S, E) f32

    # residual + norm1 (post-norm, as nn.TransformerEncoderLayer default)
    h = _layernorm(h + attn, n1w_ref[...], n1b_ref[...])

    # ---- feed-forward (ReLU) ----
    ff = (jnp.dot(h.astype(cd), w1_ref[...],
                  preferred_element_type=jnp.float32) + b1_ref[...])        # (S, Dff)
    ff = jnp.maximum(ff, 0.0)
    ff = (jnp.dot(ff.astype(cd), w2_ref[...],
                  preferred_element_type=jnp.float32) + b2_ref[...])        # (S, E)

    # residual + norm2
    h = _layernorm(h + ff, n2w_ref[...], n2b_ref[...])
    h_ref[...] = h

    # ---- epilogue (last layer): mean over sequence + fc_out ----
    @pl.when(layer == pl.num_programs(1) - 1)
    def _():
        pooled = jnp.mean(h, axis=0, keepdims=True)                         # (1, E)
        out_ref[...] = (jnp.dot(pooled.astype(cd), fcw_ref[...],
                                preferred_element_type=jnp.float32)
                        + fcb_ref[...])


# --------------------------------- wrapper ------------------------------------

def transformer_forward(x, params, *, num_heads, compute_dtype=jnp.bfloat16):
    """x: (B, S, input_dim) float32. Returns (B, output_dim) float32."""
    B, S, Din = x.shape
    E = params["emb_w"].shape[0]          # PyTorch-style Linear weight: (out, in)
    O = params["fc_w"].shape[0]
    L = params["ipw"].shape[0]
    Dff = params["l1w"].shape[1]
    H = num_heads
    assert E % H == 0
    dh = E // H
    cd = compute_dtype
    f32 = jnp.float32

    # ---- weight prep: (in, out) layouts, heads pre-split, MXU weights in bf16 ----
    emb_w = params["emb_w"].T.astype(cd)                          # (Din, E)
    emb_b = params["emb_b"].reshape(1, E).astype(f32)

    ipw_t = jnp.transpose(params["ipw"], (0, 2, 1))               # (L, E, 3E)  x @ W form

    def head_w(w):   # (L, E, E) -> (L, H, E, dh)
        return jnp.transpose(w.reshape(L, E, H, dh), (0, 2, 1, 3)).astype(cd)

    def head_b(b):   # (L, E) -> (L, H, 1, dh)
        return b.reshape(L, H, 1, dh).astype(f32)

    wq = head_w(ipw_t[:, :, 0 * E:1 * E])
    wk = head_w(ipw_t[:, :, 1 * E:2 * E])
    wv = head_w(ipw_t[:, :, 2 * E:3 * E])
    bq = head_b(params["ipb"][:, 0 * E:1 * E])
    bk = head_b(params["ipb"][:, 1 * E:2 * E])
    bv = head_b(params["ipb"][:, 2 * E:3 * E])

    # out_proj: (E,E) torch (out,in) -> (in,out) -> per-head (L, H, dh, E)
    wo = jnp.transpose(params["opw"], (0, 2, 1)).reshape(L, H, dh, E).astype(cd)
    bo = params["opb"].reshape(L, 1, E).astype(f32)

    n1w = params["n1w"].reshape(L, 1, E).astype(f32)
    n1b = params["n1b"].reshape(L, 1, E).astype(f32)
    n2w = params["n2w"].reshape(L, 1, E).astype(f32)
    n2b = params["n2b"].reshape(L, 1, E).astype(f32)

    w1 = jnp.transpose(params["l1w"], (0, 2, 1)).astype(cd)       # (L, E, Dff)
    b1 = params["l1b"].reshape(L, 1, Dff).astype(f32)
    w2 = jnp.transpose(params["l2w"], (0, 2, 1)).astype(cd)       # (L, Dff, E)
    b2 = params["l2b"].reshape(L, 1, E).astype(f32)

    fcw = params["fc_w"].T.astype(cd)                             # (E, O)
    fcb = params["fc_b"].reshape(1, O).astype(f32)

    # ---- BlockSpecs: per-layer weights streamed on the layer axis ----
    def layer_spec(*tail):
        zeros = (0,) * len(tail)
        return pl.BlockSpec((None, *tail), lambda b, l: (l, *zeros))

    def fixed_spec(*shape):
        zeros = (0,) * len(shape)
        return pl.BlockSpec(shape, lambda b, l: zeros)

    in_specs = [
        pl.BlockSpec((None, S, Din), lambda b, l: (b, 0, 0)),     # x: one batch element
        fixed_spec(Din, E), fixed_spec(1, E),                     # embedding
        layer_spec(H, E, dh), layer_spec(H, 1, dh),               # wq, bq
        layer_spec(H, E, dh), layer_spec(H, 1, dh),               # wk, bk
        layer_spec(H, E, dh), layer_spec(H, 1, dh),               # wv, bv
        layer_spec(H, dh, E), layer_spec(1, E),                   # wo, bo
        layer_spec(1, E), layer_spec(1, E),                       # norm1 w, b
        layer_spec(E, Dff), layer_spec(1, Dff),                   # ffn linear1
        layer_spec(Dff, E), layer_spec(1, E),                     # ffn linear2
        layer_spec(1, E), layer_spec(1, E),                       # norm2 w, b
        fixed_spec(E, O), fixed_spec(1, O),                       # fc_out
    ]
    out_spec = pl.BlockSpec((None, 1, O), lambda b, l: (b, 0, 0))

    kernel = functools.partial(transformer_kernel, cd)

    out = pl.pallas_call(
        kernel,
        out_shape=jax.ShapeDtypeStruct((B, 1, O), jnp.float32),
        grid_spec=pltpu.PrefetchScalarGridSpec(
            num_scalar_prefetch=0,
            grid=(B, L),                                   # batch parallel, layers sequential
            in_specs=in_specs,
            out_specs=out_spec,
            scratch_shapes=[pltpu.VMEM((S, E), jnp.float32)],   # residual stream carry
        ),
        compiler_params=pltpu.CompilerParams(
            dimension_semantics=("parallel", "arbitrary"),
            # sized to leave headroom on v7x's 64 MiB physical VMEM; per-layer weight
            # streaming keeps the real footprint tiny at these shapes.
            vmem_limit_bytes=48 * 1024 * 1024,
        ),
    )(x.astype(jnp.float32), emb_w, emb_b,
      wq, bq, wk, bk, wv, bv, wo, bo,
      n1w, n1b, w1, b1, w2, b2, n2w, n2b, fcw, fcb)

    return out.reshape(B, O)


# ------------------------- pure-JAX reference (for check) ---------------------

def reference_forward(x, params, *, num_heads):
    B, S, Din = x.shape
    E = params["emb_w"].shape[0]
    L = params["ipw"].shape[0]
    dh = E // num_heads
    scale = 1.0 / float(dh) ** 0.5

    h = x @ params["emb_w"].T + params["emb_b"]
    for l in range(L):
        qkv = h @ params["ipw"][l].T + params["ipb"][l]
        q, k, v = jnp.split(qkv, 3, axis=-1)
        q = q.reshape(B, S, num_heads, dh).transpose(0, 2, 1, 3)
        k = k.reshape(B, S, num_heads, dh).transpose(0, 2, 1, 3)
        v = v.reshape(B, S, num_heads, dh).transpose(0, 2, 1, 3)
        sc = jnp.einsum("bhqd,bhkd->bhqk", q, k) * scale
        p = jax.nn.softmax(sc, axis=-1)
        attn = jnp.einsum("bhqk,bhkd->bhqd", p, v).transpose(0, 2, 1, 3).reshape(B, S, E)
        attn = attn @ params["opw"][l].T + params["opb"][l]

        def ln(y, w, b, eps=1e-5):
            mu = jnp.mean(y, axis=-1, keepdims=True)
            var = jnp.mean((y - mu) ** 2, axis=-1, keepdims=True)
            return (y - mu) * lax.rsqrt(var + eps) * w + b

        h = ln(h + attn, params["n1w"][l], params["n1b"][l])
        ff = jax.nn.relu(h @ params["l1w"][l].T + params["l1b"][l])
        ff = ff @ params["l2w"][l].T + params["l2b"][l]
        h = ln(h + ff, params["n2w"][l], params["n2b"][l])
    pooled = h.mean(axis=1)
    return pooled @ params["fc_w"].T + params["fc_b"]


# ------------------------------- param init -----------------------------------

def init_params(key, input_dim, hidden_dim, output_dim, num_layers):
    E, Dff, O = hidden_dim, 2 * hidden_dim, output_dim
    ks = jax.random.split(key, 16)

    def u(k, shape, scale=0.1):
        return jax.random.uniform(k, shape, jnp.float32, -scale, scale)

    return {
        # PyTorch-style weight shapes: Linear weight is (out, in).
        "emb_w": u(ks[0], (E, input_dim)),
        "emb_b": u(ks[1], (E,)),
        "ipw":  u(ks[2], (num_layers, 3 * E, E)),
        "ipb":  u(ks[3], (num_layers, 3 * E)),
        "opw":  u(ks[4], (num_layers, E, E)),
        "opb":  u(ks[5], (num_layers, E)),
        "n1w":  jnp.ones((num_layers, E), jnp.float32),
        "n1b":  jnp.zeros((num_layers, E), jnp.float32),
        "n2w":  jnp.ones((num_layers, E), jnp.float32),
        "n2b":  jnp.zeros((num_layers, E), jnp.float32),
        "l1w":  u(ks[6], (num_layers, Dff, E)),
        "l1b":  u(ks[7], (num_layers, Dff)),
        "l2w":  u(ks[8], (num_layers, E, Dff)),
        "l2b":  u(ks[9], (num_layers, E)),
        "fc_w": u(ks[10], (O, E)),
        "fc_b": u(ks[11], (O,)),
    }


# ----------------------------------- main --------------------------------------

if __name__ == "__main__":
    B, S = 2, 8
    input_dim, hidden_dim, output_dim = 16, 32, 8
    num_heads, num_layers = 4, 2

    key = jax.random.PRNGKey(0)
    kx, kp = jax.random.split(key)
    x = jax.random.normal(kx, (B, S, input_dim), jnp.float32)
    params = init_params(kp, input_dim, hidden_dim, output_dim, num_layers)

    out = transformer_forward(x, params, num_heads=num_heads)
    out = jax.block_until_ready(out)

    ref = reference_forward(x, params, num_heads=num_heads)
    assert out.shape == (B, output_dim)
    # bf16 MXU operands vs f32 reference -> tolerance loosened accordingly.
    err = jnp.max(jnp.abs(out - ref))
    assert jnp.allclose(out, ref, rtol=2e-2, atol=2e-2), (err, out, ref)

    print("KERNEL_OK")
</pallas_src>

<mosaic_0001>
module attributes {stable_mosaic.version = 11 : i64} {
  func.func @transformer_kernel(%arg0: i32, %arg1: i32, %arg2: memref<1x8x16xf32, #tpu.memory_space<vmem>>, %arg3: memref<16x32xbf16, #tpu.memory_space<vmem>>, %arg4: memref<1x32xf32, #tpu.memory_space<vmem>>, %arg5: memref<1x4x32x8xbf16, #tpu.memory_space<vmem>>, %arg6: memref<1x4x1x8xf32, #tpu.memory_space<vmem>>, %arg7: memref<1x4x32x8xbf16, #tpu.memory_space<vmem>>, %arg8: memref<1x4x1x8xf32, #tpu.memory_space<vmem>>, %arg9: memref<1x4x32x8xbf16, #tpu.memory_space<vmem>>, %arg10: memref<1x4x1x8xf32, #tpu.memory_space<vmem>>, %arg11: memref<1x4x8x32xbf16, #tpu.memory_space<vmem>>, %arg12: memref<1x1x32xf32, #tpu.memory_space<vmem>>, %arg13: memref<1x1x32xf32, #tpu.memory_space<vmem>>, %arg14: memref<1x1x32xf32, #tpu.memory_space<vmem>>, %arg15: memref<1x32x64xbf16, #tpu.memory_space<vmem>>, %arg16: memref<1x1x64xf32, #tpu.memory_space<vmem>>, %arg17: memref<1x64x32xbf16, #tpu.memory_space<vmem>>, %arg18: memref<1x1x32xf32, #tpu.memory_space<vmem>>, %arg19: memref<1x1x32xf32, #tpu.memory_space<vmem>>, %arg20: memref<1x1x32xf32, #tpu.memory_space<vmem>>, %arg21: memref<32x8xbf16, #tpu.memory_space<vmem>>, %arg22: memref<1x8xf32, #tpu.memory_space<vmem>>, %arg23: memref<1x1x8xf32, #tpu.memory_space<vmem>>, %arg24: memref<8x32xf32, #tpu.memory_space<vmem>>) attributes {dimension_semantics = [#tpu.dimension_semantics<parallel>, #tpu.dimension_semantics<arbitrary>], iteration_bounds = array<i64: 2, 2>, scalar_prefetch = 0 : i64, scratch_operands = 1 : i64, tpu.core_type = #tpu.core_type<tc>, window_params = [{transform_indices = @transform_0, window_bounds = array<i64: 1, 8, 16>}, {pipeline_mode = #tpu.pipeline_mode<synchronous>, transform_indices = @transform_1, window_bounds = array<i64: 16, 32>}, {pipeline_mode = #tpu.pipeline_mode<synchronous>, transform_indices = @transform_2, window_bounds = array<i64: 1, 32>}, {transform_indices = @transform_3, window_bounds = array<i64: 1, 4, 32, 8>}, {transform_indices = @transform_4, window_bounds = array<i64: 1, 4, 1, 8>}, {transform_indices = @transform_5, window_bounds = array<i64: 1, 4, 32, 8>}, {transform_indices = @transform_6, window_bounds = array<i64: 1, 4, 1, 8>}, {transform_indices = @transform_7, window_bounds = array<i64: 1, 4, 32, 8>}, {transform_indices = @transform_8, window_bounds = array<i64: 1, 4, 1, 8>}, {transform_indices = @transform_9, window_bounds = array<i64: 1, 4, 8, 32>}, {transform_indices = @transform_10, window_bounds = array<i64: 1, 1, 32>}, {transform_indices = @transform_11, window_bounds = array<i64: 1, 1, 32>}, {transform_indices = @transform_12, window_bounds = array<i64: 1, 1, 32>}, {transform_indices = @transform_13, window_bounds = array<i64: 1, 32, 64>}, {transform_indices = @transform_14, window_bounds = array<i64: 1, 1, 64>}, {transform_indices = @transform_15, window_bounds = array<i64: 1, 64, 32>}, {transform_indices = @transform_16, window_bounds = array<i64: 1, 1, 32>}, {transform_indices = @transform_17, window_bounds = array<i64: 1, 1, 32>}, {transform_indices = @transform_18, window_bounds = array<i64: 1, 1, 32>}, {pipeline_mode = #tpu.pipeline_mode<synchronous>, transform_indices = @transform_19, window_bounds = array<i64: 32, 8>}, {pipeline_mode = #tpu.pipeline_mode<synchronous>, transform_indices = @transform_20, window_bounds = array<i64: 1, 8>}, {transform_indices = @transform_21, window_bounds = array<i64: 1, 1, 8>}]} {
    %c0_i32 = arith.constant 0 : i32
    %0 = arith.cmpi eq, %arg1, %c0_i32 : i32
    %1 = arith.extui %0 : i1 to i32
    %c0_i32_0 = arith.constant 0 : i32
    %2 = arith.cmpi ne, %1, %c0_i32_0 : i32
    scf.if %2 {
      %c0_82 = arith.constant 0 : index
      %c0_83 = arith.constant 0 : index
      %c0_84 = arith.constant 0 : index
      %127 = vector.load %arg2[%c0_82, %c0_83, %c0_84] : memref<1x8x16xf32, #tpu.memory_space<vmem>>, vector<1x8x16xf32>
      %128 = vector.shape_cast %127 : vector<1x8x16xf32> to vector<8x16xf32>
      %129 = arith.truncf %128 : vector<8x16xf32> to vector<8x16xbf16>
      %c0_85 = arith.constant 0 : index
      %c0_86 = arith.constant 0 : index
      %130 = vector.load %arg3[%c0_85, %c0_86] : memref<16x32xbf16, #tpu.memory_space<vmem>>, vector<16x32xbf16>
      %cst_87 = arith.constant dense<0.000000e+00> : vector<8x32xf32>
      %131 = tpu.matmul %129, %130, %cst_87 {dimension_numbers = #tpu.dot_dimension_numbers<[1], [0], [0], [1], [0, 0, 1, 1], [], []>} : vector<8x16xbf16>, vector<16x32xbf16>, vector<8x32xf32> -> vector<8x32xf32>
      %c0_88 = arith.constant 0 : index
      %c0_89 = arith.constant 0 : index
      %132 = vector.load %arg4[%c0_88, %c0_89] : memref<1x32xf32, #tpu.memory_space<vmem>>, vector<1x32xf32>
      %133 = vector.broadcast %132 : vector<1x32xf32> to vector<8x32xf32>
      %134 = arith.addf %131, %133 : vector<8x32xf32>
      %c0_90 = arith.constant 0 : index
      %c0_91 = arith.constant 0 : index
      %135 = vector.load %arg24[%c0_90, %c0_91] : memref<8x32xf32, #tpu.memory_space<vmem>>, vector<8x32xf32>
      tpu.vector_store %arg24[%c0_90, %c0_91], %134 {strides = array<i32>} : memref<8x32xf32, #tpu.memory_space<vmem>>, vector<8x32xf32>,
    } else {
    }
    %c0 = arith.constant 0 : index
    %c0_1 = arith.constant 0 : index
    %3 = vector.load %arg24[%c0, %c0_1] : memref<8x32xf32, #tpu.memory_space<vmem>>, vector<8x32xf32>
    %4 = arith.truncf %3 : vector<8x32xf32> to vector<8x32xbf16>
    %5 = vector.shape_cast %4 : vector<8x32xbf16> to vector<1x8x32xbf16>
    %6 = vector.broadcast %5 : vector<1x8x32xbf16> to vector<4x8x32xbf16>
    %c0_2 = arith.constant 0 : index
    %c0_3 = arith.constant 0 : index
    %c0_4 = arith.constant 0 : index
    %c0_5 = arith.constant 0 : index
    %7 = vector.load %arg5[%c0_2, %c0_3, %c0_4, %c0_5] : memref<1x4x32x8xbf16, #tpu.memory_space<vmem>>, vector<1x4x32x8xbf16>
    %8 = vector.shape_cast %7 : vector<1x4x32x8xbf16> to vector<4x32x8xbf16>
    %cst = arith.constant dense<0.000000e+00> : vector<4x8x8xf32>
    %9 = tpu.matmul %6, %8, %cst {dimension_numbers = #tpu.dot_dimension_numbers<[2], [1], [1], [2], [0, 0, 0, 1, 1, 2], [0], [0]>} : vector<4x8x32xbf16>, vector<4x32x8xbf16>, vector<4x8x8xf32> -> vector<4x8x8xf32>
    %c0_6 = arith.constant 0 : index
    %c0_7 = arith.constant 0 : index
    %c0_8 = arith.constant 0 : index
    %c0_9 = arith.constant 0 : index
    %10 = vector.load %arg6[%c0_6, %c0_7, %c0_8, %c0_9] : memref<1x4x1x8xf32, #tpu.memory_space<vmem>>, vector<1x4x1x8xf32>
    %11 = vector.shape_cast %10 : vector<1x4x1x8xf32> to vector<4x1x8xf32>
    %12 = vector.broadcast %11 : vector<4x1x8xf32> to vector<4x8x8xf32>
    %13 = arith.addf %9, %12 : vector<4x8x8xf32>
    %c0_10 = arith.constant 0 : index
    %c0_11 = arith.constant 0 : index
    %c0_12 = arith.constant 0 : index
    %c0_13 = arith.constant 0 : index
    %14 = vector.load %arg7[%c0_10, %c0_11, %c0_12, %c0_13] : memref<1x4x32x8xbf16, #tpu.memory_space<vmem>>, vector<1x4x32x8xbf16>
    %15 = vector.shape_cast %14 : vector<1x4x32x8xbf16> to vector<4x32x8xbf16>
    %cst_14 = arith.constant dense<0.000000e+00> : vector<4x8x8xf32>
    %16 = tpu.matmul %6, %15, %cst_14 {dimension_numbers = #tpu.dot_dimension_numbers<[2], [1], [1], [2], [0, 0, 0, 1, 1, 2], [0], [0]>} : vector<4x8x32xbf16>, vector<4x32x8xbf16>, vector<4x8x8xf32> -> vector<4x8x8xf32>
    %c0_15 = arith.constant 0 : index
    %c0_16 = arith.constant 0 : index
    %c0_17 = arith.constant 0 : index
    %c0_18 = arith.constant 0 : index
    %17 = vector.load %arg8[%c0_15, %c0_16, %c0_17, %c0_18] : memref<1x4x1x8xf32, #tpu.memory_space<vmem>>, vector<1x4x1x8xf32>
    %18 = vector.shape_cast %17 : vector<1x4x1x8xf32> to vector<4x1x8xf32>
    %19 = vector.broadcast %18 : vector<4x1x8xf32> to vector<4x8x8xf32>
    %20 = arith.addf %16, %19 : vector<4x8x8xf32>
    %c0_19 = arith.constant 0 : index
    %c0_20 = arith.constant 0 : index
    %c0_21 = arith.constant 0 : index
    %c0_22 = arith.constant 0 : index
    %21 = vector.load %arg9[%c0_19, %c0_20, %c0_21, %c0_22] : memref<1x4x32x8xbf16, #tpu.memory_space<vmem>>, vector<1x4x32x8xbf16>
    %22 = vector.shape_cast %21 : vector<1x4x32x8xbf16> to vector<4x32x8xbf16>
    %cst_23 = arith.constant dense<0.000000e+00> : vector<4x8x8xf32>
    %23 = tpu.matmul %6, %22, %cst_23 {dimension_numbers = #tpu.dot_dimension_numbers<[2], [1], [1], [2], [0, 0, 0, 1, 1, 2], [0], [0]>} : vector<4x8x32xbf16>, vector<4x32x8xbf16>, vector<4x8x8xf32> -> vector<4x8x8xf32>
    %c0_24 = arith.constant 0 : index
    %c0_25 = arith.constant 0 : index
    %c0_26 = arith.constant 0 : index
    %c0_27 = arith.constant 0 : index
    %24 = vector.load %arg10[%c0_24, %c0_25, %c0_26, %c0_27] : memref<1x4x1x8xf32, #tpu.memory_space<vmem>>, vector<1x4x1x8xf32>
    %25 = vector.shape_cast %24 : vector<1x4x1x8xf32> to vector<4x1x8xf32>
    %26 = vector.broadcast %25 : vector<4x1x8xf32> to vector<4x8x8xf32>
    %27 = arith.addf %23, %26 : vector<4x8x8xf32>
    %28 = arith.truncf %13 : vector<4x8x8xf32> to vector<4x8x8xbf16>
    %29 = arith.truncf %20 : vector<4x8x8xf32> to vector<4x8x8xbf16>
    %cst_28 = arith.constant dense<0.000000e+00> : vector<4x8x8xf32>
    %30 = tpu.matmul %28, %29, %cst_28 {dimension_numbers = #tpu.dot_dimension_numbers<[2], [2], [1], [1], [0, 0, 0, 1, 1, 1], [0], [0]>} : vector<4x8x8xbf16>, vector<4x8x8xbf16>, vector<4x8x8xf32> -> vector<4x8x8xf32>
    %cst_29 = arith.constant 0.353553385 : f32
    %31 = vector.broadcast %cst_29 : f32 to vector<4x8x8xf32>
    %32 = arith.mulf %30, %31 : vector<4x8x8xf32>
    %cst_30 = arith.constant dense<0xFF800000> : vector<4x8xf32>
    %33 = vector.multi_reduction <maximumf>, %32, %cst_30 [2] : vector<4x8x8xf32> to vector<4x8xf32>
    %34 = vector.shape_cast %33 : vector<4x8xf32> to vector<4x8x1xf32>
    %35 = vector.broadcast %34 : vector<4x8x1xf32> to vector<4x8x8xf32>
    %36 = arith.subf %32, %35 : vector<4x8x8xf32>
    %37 = math.exp %36 : vector<4x8x8xf32>
    %cst_31 = arith.constant dense<0.000000e+00> : vector<4x8xf32>
    %38 = vector.multi_reduction <add>, %37, %cst_31 [2] : vector<4x8x8xf32> to vector<4x8xf32>
    %39 = vector.shape_cast %38 : vector<4x8xf32> to vector<4x8x1xf32>
    %40 = tpu.reciprocal %39 {approx = true} : vector<4x8x1xf32> -> vector<4x8x1xf32>
    %41 = vector.broadcast %40 : vector<4x8x1xf32> to vector<4x8x8xf32>
    %42 = arith.mulf %37, %41 : vector<4x8x8xf32>
    %43 = arith.truncf %42 : vector<4x8x8xf32> to vector<4x8x8xbf16>
    %44 = arith.truncf %27 : vector<4x8x8xf32> to vector<4x8x8xbf16>
    %cst_32 = arith.constant dense<0.000000e+00> : vector<4x8x8xf32>
    %45 = tpu.matmul %43, %44, %cst_32 {dimension_numbers = #tpu.dot_dimension_numbers<[2], [1], [1], [2], [0, 0, 0, 1, 1, 2], [0], [0]>} : vector<4x8x8xbf16>, vector<4x8x8xbf16>, vector<4x8x8xf32> -> vector<4x8x8xf32>
    %46 = arith.truncf %45 : vector<4x8x8xf32> to vector<4x8x8xbf16>
    %c0_33 = arith.constant 0 : index
    %c0_34 = arith.constant 0 : index
    %c0_35 = arith.constant 0 : index
    %c0_36 = arith.constant 0 : index
    %47 = vector.load %arg11[%c0_33, %c0_34, %c0_35, %c0_36] : memref<1x4x8x32xbf16, #tpu.memory_space<vmem>>, vector<1x4x8x32xbf16>
    %48 = vector.shape_cast %47 : vector<1x4x8x32xbf16> to vector<4x8x32xbf16>
    %cst_37 = arith.constant dense<0.000000e+00> : vector<4x8x32xf32>
    %49 = tpu.matmul %46, %48, %cst_37 {dimension_numbers = #tpu.dot_dimension_numbers<[2], [1], [1], [2], [0, 0, 0, 1, 1, 2], [0], [0]>} : vector<4x8x8xbf16>, vector<4x8x32xbf16>, vector<4x8x32xf32> -> vector<4x8x32xf32>
    %cst_38 = arith.constant dense<0.000000e+00> : vector<8x32xf32>
    %50 = vector.multi_reduction <add>, %49, %cst_38 [0] : vector<4x8x32xf32> to vector<8x32xf32>
    %c0_39 = arith.constant 0 : index
    %c0_40 = arith.constant 0 : index
    %c0_41 = arith.constant 0 : index
    %51 = vector.load %arg12[%c0_39, %c0_40, %c0_41] : memref<1x1x32xf32, #tpu.memory_space<vmem>>, vector<1x1x32xf32>
    %52 = vector.shape_cast %51 : vector<1x1x32xf32> to vector<1x32xf32>
    %53 = vector.broadcast %52 : vector<1x32xf32> to vector<8x32xf32>
    %54 = arith.addf %50, %53 : vector<8x32xf32>
    %55 = arith.addf %3, %54 : vector<8x32xf32>
    %c0_42 = arith.constant 0 : index
    %c0_43 = arith.constant 0 : index
    %c0_44 = arith.constant 0 : index
    %56 = vector.load %arg13[%c0_42, %c0_43, %c0_44] : memref<1x1x32xf32, #tpu.memory_space<vmem>>, vector<1x1x32xf32>
    %57 = vector.shape_cast %56 : vector<1x1x32xf32> to vector<1x32xf32>
    %c0_45 = arith.constant 0 : index
    %c0_46 = arith.constant 0 : index
    %c0_47 = arith.constant 0 : index
    %58 = vector.load %arg14[%c0_45, %c0_46, %c0_47] : memref<1x1x32xf32, #tpu.memory_space<vmem>>, vector<1x1x32xf32>
    %59 = vector.shape_cast %58 : vector<1x1x32xf32> to vector<1x32xf32>
    %cst_48 = arith.constant dense<0.000000e+00> : vector<8xf32>
    %60 = vector.multi_reduction <add>, %55, %cst_48 [1] : vector<8x32xf32> to vector<8xf32>
    %61 = vector.shape_cast %60 : vector<8xf32> to vector<8x1xf32>
    %cst_49 = arith.constant 3.200000e+01 : f32
    %62 = vector.broadcast %cst_49 : f32 to vector<8x1xf32>
    %63 = arith.divf %61, %62 : vector<8x1xf32>
    %64 = vector.broadcast %63 : vector<8x1xf32> to vector<8x32xf32>
    %65 = arith.subf %55, %64 : vector<8x32xf32>
    %66 = arith.mulf %65, %65 : vector<8x32xf32>
    %cst_50 = arith.constant dense<0.000000e+00> : vector<8xf32>
    %67 = vector.multi_reduction <add>, %66, %cst_50 [1] : vector<8x32xf32> to vector<8xf32>
    %68 = vector.shape_cast %67 : vector<8xf32> to vector<8x1xf32>
    %cst_51 = arith.constant 3.200000e+01 : f32
    %69 = vector.broadcast %cst_51 : f32 to vector<8x1xf32>
    %70 = arith.divf %68, %69 : vector<8x1xf32>
    %cst_52 = arith.constant 9.99999974E-6 : f32
    %71 = vector.broadcast %cst_52 : f32 to vector<8x1xf32>
    %72 = arith.addf %70, %71 : vector<8x1xf32>
    %73 = math.rsqrt %72 : vector<8x1xf32>
    %74 = vector.broadcast %73 : vector<8x1xf32> to vector<8x32xf32>
    %75 = arith.mulf %65, %74 : vector<8x32xf32>
    %76 = vector.broadcast %57 : vector<1x32xf32> to vector<8x32xf32>
    %77 = arith.mulf %75, %76 : vector<8x32xf32>
    %78 = vector.broadcast %59 : vector<1x32xf32> to vector<8x32xf32>
    %79 = arith.addf %77, %78 : vector<8x32xf32>
    %80 = arith.truncf %79 : vector<8x32xf32> to vector<8x32xbf16>
    %c0_53 = arith.constant 0 : index
    %c0_54 = arith.constant 0 : index
    %c0_55 = arith.constant 0 : index
    %81 = vector.load %arg15[%c0_53, %c0_54, %c0_55] : memref<1x32x64xbf16, #tpu.memory_space<vmem>>, vector<1x32x64xbf16>
    %82 = vector.shape_cast %81 : vector<1x32x64xbf16> to vector<32x64xbf16>
    %cst_56 = arith.constant dense<0.000000e+00> : vector<8x64xf32>
    %83 = tpu.matmul %80, %82, %cst_56 {dimension_numbers = #tpu.dot_dimension_numbers<[1], [0], [0], [1], [0, 0, 1, 1], [], []>} : vector<8x32xbf16>, vector<32x64xbf16>, vector<8x64xf32> -> vector<8x64xf32>
    %c0_57 = arith.constant 0 : index
    %c0_58 = arith.constant 0 : index
    %c0_59 = arith.constant 0 : index
    %84 = vector.load %arg16[%c0_57, %c0_58, %c0_59] : memref<1x1x64xf32, #tpu.memory_space<vmem>>, vector<1x1x64xf32>
    %85 = vector.shape_cast %84 : vector<1x1x64xf32> to vector<1x64xf32>
    %86 = vector.broadcast %85 : vector<1x64xf32> to vector<8x64xf32>
    %87 = arith.addf %83, %86 : vector<8x64xf32>
    %cst_60 = arith.constant 0.000000e+00 : f32
    %88 = vector.broadcast %cst_60 : f32 to vector<8x64xf32>
    %89 = arith.maximumf %87, %88 : vector<8x64xf32>
    %90 = arith.truncf %89 : vector<8x64xf32> to vector<8x64xbf16>
    %c0_61 = arith.constant 0 : index
    %c0_62 = arith.constant 0 : index
    %c0_63 = arith.constant 0 : index
    %91 = vector.load %arg17[%c0_61, %c0_62, %c0_63] : memref<1x64x32xbf16, #tpu.memory_space<vmem>>, vector<1x64x32xbf16>
    %92 = vector.shape_cast %91 : vector<1x64x32xbf16> to vector<64x32xbf16>
    %cst_64 = arith.constant dense<0.000000e+00> : vector<8x32xf32>
    %93 = tpu.matmul %90, %92, %cst_64 {dimension_numbers = #tpu.dot_dimension_numbers<[1], [0], [0], [1], [0, 0, 1, 1], [], []>} : vector<8x64xbf16>, vector<64x32xbf16>, vector<8x32xf32> -> vector<8x32xf32>
    %c0_65 = arith.constant 0 : index
    %c0_66 = arith.constant 0 : index
    %c0_67 = arith.constant 0 : index
    %94 = vector.load %arg18[%c0_65, %c0_66, %c0_67] : memref<1x1x32xf32, #tpu.memory_space<vmem>>, vector<1x1x32xf32>
    %95 = vector.shape_cast %94 : vector<1x1x32xf32> to vector<1x32xf32>
    %96 = vector.broadcast %95 : vector<1x32xf32> to vector<8x32xf32>
    %97 = arith.addf %93, %96 : vector<8x32xf32>
    %98 = arith.addf %79, %97 : vector<8x32xf32>
    %c0_68 = arith.constant 0 : index
    %c0_69 = arith.constant 0 : index
    %c0_70 = arith.constant 0 : index
    %99 = vector.load %arg19[%c0_68, %c0_69, %c0_70] : memref<1x1x32xf32, #tpu.memory_space<vmem>>, vector<1x1x32xf32>
    %100 = vector.shape_cast %99 : vector<1x1x32xf32> to vector<1x32xf32>
    %c0_71 = arith.constant 0 : index
    %c0_72 = arith.constant 0 : index
    %c0_73 = arith.constant 0 : index
    %101 = vector.load %arg20[%c0_71, %c0_72, %c0_73] : memref<1x1x32xf32, #tpu.memory_space<vmem>>, vector<1x1x32xf32>
    %102 = vector.shape_cast %101 : vector<1x1x32xf32> to vector<1x32xf32>
    %cst_74 = arith.constant dense<0.000000e+00> : vector<8xf32>
    %103 = vector.multi_reduction <add>, %98, %cst_74 [1] : vector<8x32xf32> to vector<8xf32>
    %104 = vector.shape_cast %103 : vector<8xf32> to vector<8x1xf32>
    %cst_75 = arith.constant 3.200000e+01 : f32
    %105 = vector.broadcast %cst_75 : f32 to vector<8x1xf32>
    %106 = arith.divf %104, %105 : vector<8x1xf32>
    %107 = vector.broadcast %106 : vector<8x1xf32> to vector<8x32xf32>
    %108 = arith.subf %98, %107 : vector<8x32xf32>
    %109 = arith.mulf %108, %108 : vector<8x32xf32>
    %cst_76 = arith.constant dense<0.000000e+00> : vector<8xf32>
    %110 = vector.multi_reduction <add>, %109, %cst_76 [1] : vector<8x32xf32> to vector<8xf32>
    %111 = vector.shape_cast %110 : vector<8xf32> to vector<8x1xf32>
    %cst_77 = arith.constant 3.200000e+01 : f32
    %112 = vector.broadcast %cst_77 : f32 to vector<8x1xf32>
    %113 = arith.divf %111, %112 : vector<8x1xf32>
    %cst_78 = arith.constant 9.99999974E-6 : f32
    %114 = vector.broadcast %cst_78 : f32 to vector<8x1xf32>
    %115 = arith.addf %113, %114 : vector<8x1xf32>
    %116 = math.rsqrt %115 : vector<8x1xf32>
    %117 = vector.broadcast %116 : vector<8x1xf32> to vector<8x32xf32>
    %118 = arith.mulf %108, %117 : vector<8x32xf32>
    %119 = vector.broadcast %100 : vector<1x32xf32> to vector<8x32xf32>
    %120 = arith.mulf %118, %119 : vector<8x32xf32>
    %121 = vector.broadcast %102 : vector<1x32xf32> to vector<8x32xf32>
    %122 = arith.addf %120, %121 : vector<8x32xf32>
    %c0_79 = arith.constant 0 : index
    %c0_80 = arith.constant 0 : index
    %123 = vector.load %arg24[%c0_79, %c0_80] : memref<8x32xf32, #tpu.memory_space<vmem>>, vector<8x32xf32>
    tpu.vector_store %arg24[%c0_79, %c0_80], %122 {strides = array<i32>} : memref<8x32xf32, #tpu.memory_space<vmem>>, vector<8x32xf32>,
    %c1_i32 = arith.constant 1 : i32
    %124 = arith.cmpi eq, %arg1, %c1_i32 : i32
    %125 = arith.extui %124 : i1 to i32
    %c0_i32_81 = arith.constant 0 : i32
    %126 = arith.cmpi ne, %125, %c0_i32_81 : i32
    scf.if %126 {
      %cst_82 = arith.constant dense<0.000000e+00> : vector<32xf32>
      %127 = vector.multi_reduction <add>, %122, %cst_82 [0] : vector<8x32xf32> to vector<32xf32>
      %128 = vector.shape_cast %127 : vector<32xf32> to vector<1x32xf32>
      %cst_83 = arith.constant 8.000000e+00 : f32
      %129 = vector.broadcast %cst_83 : f32 to vector<1x32xf32>
      %130 = arith.divf %128, %129 : vector<1x32xf32>
      %131 = arith.truncf %130 : vector<1x32xf32> to vector<1x32xbf16>
      %c0_84 = arith.constant 0 : index
      %c0_85 = arith.constant 0 : index
      %132 = vector.load %arg21[%c0_84, %c0_85] : memref<32x8xbf16, #tpu.memory_space<vmem>>, vector<32x8xbf16>
      %cst_86 = arith.constant dense<0.000000e+00> : vector<1x8xf32>
      %133 = tpu.matmul %131, %132, %cst_86 {dimension_numbers = #tpu.dot_dimension_numbers<[1], [0], [0], [1], [0, 0, 1, 1], [], []>} : vector<1x32xbf16>, vector<32x8xbf16>, vector<1x8xf32> -> vector<1x8xf32>
      %c0_87 = arith.constant 0 : index
      %c0_88 = arith.constant 0 : index
      %134 = vector.load %arg22[%c0_87, %c0_88] : memref<1x8xf32, #tpu.memory_space<vmem>>, vector<1x8xf32>
      %135 = arith.addf %133, %134 : vector<1x8xf32>
      %c0_89 = arith.constant 0 : index
      %c0_90 = arith.constant 0 : index
      %c0_91 = arith.constant 0 : index
      %136 = vector.load %arg23[%c0_89, %c0_90, %c0_91] : memref<1x1x8xf32, #tpu.memory_space<vmem>>, vector<1x1x8xf32>
      %137 = vector.shape_cast %136 : vector<1x1x8xf32> to vector<1x8xf32>
      %138 = vector.shape_cast %135 : vector<1x8xf32> to vector<1x1x8xf32>
      tpu.vector_store %arg23[%c0_89, %c0_90, %c0_91], %138 {strides = array<i32>} : memref<1x1x8xf32, #tpu.memory_space<vmem>>, vector<1x1x8xf32>,
    } else {
    }
    return
  }
  func.func @transform_0(%arg0: i32, %arg1: i32) -> (i32, i32, i32) {
    %c0_i32 = arith.constant 0 : i32
    %c0_i32_0 = arith.constant 0 : i32
    %c0_i32_1 = arith.constant 0 : i32
    return %arg0, %c0_i32, %c0_i32_0 : i32, i32, i32
  }
  func.func @transform_1(%arg0: i32, %arg1: i32) -> (i32, i32) {
    %c0_i32 = arith.constant 0 : i32
    %c0_i32_0 = arith.constant 0 : i32
    %c0_i32_1 = arith.constant 0 : i32
    return %c0_i32, %c0_i32_0 : i32, i32
  }
  func.func @transform_2(%arg0: i32, %arg1: i32) -> (i32, i32) {
    %c0_i32 = arith.constant 0 : i32
    %c0_i32_0 = arith.constant 0 : i32
    %c0_i32_1 = arith.constant 0 : i32
    return %c0_i32, %c0_i32_0 : i32, i32
  }
  func.func @transform_3(%arg0: i32, %arg1: i32) -> (i32, i32, i32, i32) {
    %c0_i32 = arith.constant 0 : i32
    %c0_i32_0 = arith.constant 0 : i32
    %c0_i32_1 = arith.constant 0 : i32
    %c0_i32_2 = arith.constant 0 : i32
    return %arg1, %c0_i32, %c0_i32_0, %c0_i32_1 : i32, i32, i32, i32
  }
  func.func @transform_4(%arg0: i32, %arg1: i32) -> (i32, i32, i32, i32) {
    %c0_i32 = arith.constant 0 : i32
    %c0_i32_0 = arith.constant 0 : i32
    %c0_i32_1 = arith.constant 0 : i32
    %c0_i32_2 = arith.constant 0 : i32
    return %arg1, %c0_i32, %c0_i32_0, %c0_i32_1 : i32, i32, i32, i32
  }
  func.func @transform_5(%arg0: i32, %arg1: i32) -> (i32, i32, i32, i32) {
    %c0_i32 = arith.constant 0 : i32
    %c0_i32_0 = arith.constant 0 : i32
    %c0_i32_1 = arith.constant 0 : i32
    %c0_i32_2 = arith.constant 0 : i32
    return %arg1, %c0_i32, %c0_i32_0, %c0_i32_1 : i32, i32, i32, i32
  }
  func.func @transform_6(%arg0: i32, %arg1: i32) -> (i32, i32, i32, i32) {
    %c0_i32 = arith.constant 0 : i32
    %c0_i32_0 = arith.constant 0 : i32
    %c0_i32_1 = arith.constant 0 : i32
    %c0_i32_2 = arith.constant 0 : i32
    return %arg1, %c0_i32, %c0_i32_0, %c0_i32_1 : i32, i32, i32, i32
  }
  func.func @transform_7(%arg0: i32, %arg1: i32) -> (i32, i32, i32, i32) {
    %c0_i32 = arith.constant 0 : i32
    %c0_i32_0 = arith.constant 0 : i32
    %c0_i32_1 = arith.constant 0 : i32
    %c0_i32_2 = arith.constant 0 : i32
    return %arg1, %c0_i32, %c0_i32_0, %c0_i32_1 : i32, i32, i32, i32
  }
  func.func @transform_8(%arg0: i32, %arg1: i32) -> (i32, i32, i32, i32) {
    %c0_i32 = arith.constant 0 : i32
    %c0_i32_0 = arith.constant 0 : i32
    %c0_i32_1 = arith.constant 0 : i32
    %c0_i32_2 = arith.constant 0 : i32
    return %arg1, %c0_i32, %c0_i32_0, %c0_i32_1 : i32, i32, i32, i32
  }
  func.func @transform_9(%arg0: i32, %arg1: i32) -> (i32, i32, i32, i32) {
    %c0_i32 = arith.constant 0 : i32
    %c0_i32_0 = arith.constant 0 : i32
    %c0_i32_1 = arith.constant 0 : i32
    %c0_i32_2 = arith.constant 0 : i32
    return %arg1, %c0_i32, %c0_i32_0, %c0_i32_1 : i32, i32, i32, i32
  }
  func.func @transform_10(%arg0: i32, %arg1: i32) -> (i32, i32, i32) {
    %c0_i32 = arith.constant 0 : i32
    %c0_i32_0 = arith.constant 0 : i32
    %c0_i32_1 = arith.constant 0 : i32
    return %arg1, %c0_i32, %c0_i32_0 : i32, i32, i32
  }
  func.func @transform_11(%arg0: i32, %arg1: i32) -> (i32, i32, i32) {
    %c0_i32 = arith.constant 0 : i32
    %c0_i32_0 = arith.constant 0 : i32
    %c0_i32_1 = arith.constant 0 : i32
    return %arg1, %c0_i32, %c0_i32_0 : i32, i32, i32
  }
  func.func @transform_12(%arg0: i32, %arg1: i32) -> (i32, i32, i32) {
    %c0_i32 = arith.constant 0 : i32
    %c0_i32_0 = arith.constant 0 : i32
    %c0_i32_1 = arith.constant 0 : i32
    return %arg1, %c0_i32, %c0_i32_0 : i32, i32, i32
  }
  func.func @transform_13(%arg0: i32, %arg1: i32) -> (i32, i32, i32) {
    %c0_i32 = arith.constant 0 : i32
    %c0_i32_0 = arith.constant 0 : i32
    %c0_i32_1 = arith.constant 0 : i32
    return %arg1, %c0_i32, %c0_i32_0 : i32, i32, i32
  }
  func.func @transform_14(%arg0: i32, %arg1: i32) -> (i32, i32, i32) {
    %c0_i32 = arith.constant 0 : i32
    %c0_i32_0 = arith.constant 0 : i32
    %c0_i32_1 = arith.constant 0 : i32
    return %arg1, %c0_i32, %c0_i32_0 : i32, i32, i32
  }
  func.func @transform_15(%arg0: i32, %arg1: i32) -> (i32, i32, i32) {
    %c0_i32 = arith.constant 0 : i32
    %c0_i32_0 = arith.constant 0 : i32
    %c0_i32_1 = arith.constant 0 : i32
    return %arg1, %c0_i32, %c0_i32_0 : i32, i32, i32
  }
  func.func @transform_16(%arg0: i32, %arg1: i32) -> (i32, i32, i32) {
    %c0_i32 = arith.constant 0 : i32
    %c0_i32_0 = arith.constant 0 : i32
    %c0_i32_1 = arith.constant 0 : i32
    return %arg1, %c0_i32, %c0_i32_0 : i32, i32, i32
  }
  func.func @transform_17(%arg0: i32, %arg1: i32) -> (i32, i32, i32) {
    %c0_i32 = arith.constant 0 : i32
    %c0_i32_0 = arith.constant 0 : i32
    %c0_i32_1 = arith.constant 0 : i32
    return %arg1, %c0_i32, %c0_i32_0 : i32, i32, i32
  }
  func.func @transform_18(%arg0: i32, %arg1: i32) -> (i32, i32, i32) {
    %c0_i32 = arith.constant 0 : i32
    %c0_i32_0 = arith.constant 0 : i32
    %c0_i32_1 = arith.constant 0 : i32
    return %arg1, %c0_i32, %c0_i32_0 : i32, i32, i32
  }
  func.func @transform_19(%arg0: i32, %arg1: i32) -> (i32, i32) {
    %c0_i32 = arith.constant 0 : i32
    %c0_i32_0 = arith.constant 0 : i32
    %c0_i32_1 = arith.constant 0 : i32
    return %c0_i32, %c0_i32_0 : i32, i32
  }
  func.func @transform_20(%arg0: i32, %arg1: i32) -> (i32, i32) {
    %c0_i32 = arith.constant 0 : i32
    %c0_i32_0 = arith.constant 0 : i32
    %c0_i32_1 = arith.constant 0 : i32
    return %c0_i32, %c0_i32_0 : i32, i32
  }
  func.func @transform_21(%arg0: i32, %arg1: i32) -> (i32, i32, i32) {
    %c0_i32 = arith.constant 0 : i32
    %c0_i32_0 = arith.constant 0 : i32
    %c0_i32_1 = arith.constant 0 : i32
    return %arg0, %c0_i32, %c0_i32_0 : i32, i32, i32
  }
}

</mosaic_0001>

<bundles_post_ra>
// kernel: tpu_custom_call.1
= control target key start
LH: loop header
LB: loop body
LE: loop exit
PB: predicated region body
PF: predicated region fallthrough
CT: control target
= control target key end

     0   :  { %s4162_s0 = inlined_call_operand.vmem [shape: f32[2,8,16], index: 0, kind: input, shape index: {}]   ;;  %s4163_s1 = inlined_call_operand.vmem [shape: bf16[16,32], index: 1, kind: input, shape index: {}]   ;;  %s4164_s2 = inlined_call_operand.vmem [shape: f32[1,32], index: 2, kind: input, shape index: {}]   ;;  %s4165_s3 = inlined_call_operand.vmem [shape: bf16[2,4,32,8], index: 3, kind: input, shape index: {}]   ;;  %s4166_s4 = inlined_call_operand.vmem [shape: f32[2,4,1,8], index: 4, kind: input, shape index: {}]   ;;  %s4167_s5 = inlined_call_operand.vmem [shape: bf16[2,4,32,8], index: 5, kind: input, shape index: {}]   ;;  %s4168_s6 = inlined_call_operand.vmem [shape: f32[2,4,1,8], index: 6, kind: input, shape index: {}]   ;;  %s4169_s7 = inlined_call_operand.vmem [shape: bf16[2,4,32,8], index: 7, kind: input, shape index: {}]   ;;  %s4170_s8 = inlined_call_operand.vmem [shape: f32[2,4,1,8], index: 8, kind: input, shape index: {}]   ;;  %s4171_s9 = inlined_call_operand.vmem [shape: bf16[2,4,8,32], index: 9, kind: input, shape index: {}]   ;;  %s4172_s10 = inlined_call_operand.vmem [shape: f32[2,1,32], index: 10, kind: input, shape index: {}]   ;;  %s4173_s11 = inlined_call_operand.vmem [shape: f32[2,1,32], index: 11, kind: input, shape index: {}]   ;;  %s4174_s12 = inlined_call_operand.vmem [shape: f32[2,1,32], index: 12, kind: input, shape index: {}]   ;;  %s4175_s13 = inlined_call_operand.vmem [shape: bf16[2,32,64], index: 13, kind: input, shape index: {}]   ;;  %s4176_s14 = inlined_call_operand.vmem [shape: f32[2,1,64], index: 14, kind: input, shape index: {}]   ;;  %s4177_s15 = inlined_call_operand.vmem [shape: bf16[2,64,32], index: 15, kind: input, shape index: {}]   ;;  %s4178_s16 = inlined_call_operand.vmem [shape: f32[2,1,32], index: 16, kind: input, shape index: {}]   ;;  %s4179_s17 = inlined_call_operand.vmem [shape: f32[2,1,32], index: 17, kind: input, shape index: {}]   ;;  %s4180_s18 = inlined_call_operand.vmem [shape: f32[2,1,32], index: 18, kind: input, shape index: {}]   ;;  %s4181_s19 = inlined_call_operand.vmem [shape: bf16[32,8], index: 19, kind: input, shape index: {}]   ;;  %s4182_s20 = inlined_call_operand.vmem [shape: f32[1,8], index: 20, kind: input, shape index: {}]   ;;  %s4183_s21 = inlined_call_operand.hbm [shape: f32[2,1,8], index: 21, kind: output, shape index: {}]  }
   0x1   :  { %4202 = sst [smem:[#allocation22_spill]] %s4162_s0 }
   0x2   :  { %4203 = sst [smem:[#allocation23_spill]] %s4163_s1 }
   0x3   :  { %4204 = sst [smem:[#allocation24_spill]] %s4164_s2 }
   0x4   :  { %4205 = sst [smem:[#allocation25_spill]] %s4165_s3 }
   0x5   :  { %4206 = sst [smem:[#allocation26_spill]] %s4166_s4 }
   0x6   :  { %4207 = sst [smem:[#allocation27_spill]] %s4167_s5 }
   0x7   :  { %4208 = sst [smem:[#allocation28_spill]] %s4168_s6 }
   0x8   :  { %4209 = sst [smem:[#allocation29_spill]] %s4169_s7 }
   0x9   :  { %4210 = sst [smem:[#allocation30_spill]] %s4170_s8 }
   0xa   :  { %4211 = sst [smem:[#allocation31_spill]] %s4171_s9 }
   0xb   :  { %4212 = sst [smem:[#allocation32_spill]] %s4175_s13 }
   0xc   :  { %4213 = sst [smem:[#allocation33_spill]] %s4180_s18 }
   0xd   :  { %4214 = sst [smem:[#allocation34_spill]] %s4181_s19 }
   0xe   :  { %4215 = sst [smem:[#allocation35_spill]] %s4182_s20 }
   0xf   :  { %4216 = sst [smem:[#allocation36_spill]] %s4183_s21 }
  0x10   :  { %26 = vsyncpa [#allocation4], 0 }
  0x11   :  { %28 = vsyncpa [#allocation4 + $0x1], 0  ;;  %s3674_s2 = smov 0   ;;  %s3676_s25 = smov 0  }
  0x12   :  { %s3678_s26 = smov 0   ;;  %s3680_s27 = smov 0  }
  0x13   :  { %s3682_s3 = smov 0   ;;  %s3684_s28 = smov 0  }
  0x14   :  { %s3686_s29 = smov 0   ;;  %s3688_s0 = smov 0  }
  0x15 LB: > { %4217 = sst [smem:[#allocation6_spill]] %s3527_s2  ;;  %s2943_s4 = sadd.s32 4294967295, %s3555_s0   ;;  %s3555_s0 = sphi %s3688_s0, %s34_s0   ;;  %s3551_s29 = sphi %s3686_s29, %s4279_s29   ;;  %s3547_s28 = sphi %s3684_s28, %s4275_s28   ;;  %s3543_s3 = sphi %s3682_s3, %s4274_s3   ;;  %s3539_s27 = sphi %s3680_s27, %s4273_s27   ;;  %s3535_s26 = sphi %s3678_s26, %s4272_s26   ;;  %s3531_s25 = sphi %s3676_s25, %s4278_s25   ;;  %s3527_s2 = sphi %s3674_s2, %s4277_s2  }
  0x16   : > { %4218 = sst [smem:[#allocation7_spill]] %s3535_s26  ;;  %s2944_s30 = sadd.s32 4294967294, %s3555_s0  }
  0x17   : > { %4219 = sst [smem:[#allocation8_spill]] %s3539_s27  ;;  %s43_s5 = sadd.s32 1, %s3547_s28 }
  0x18   : > { %4220 = sst [smem:[#allocation9_spill]] %s3543_s3  ;;  %p44_p0 = scmp.ge.s32.totalorder %s43_s5, 2 }
  0x19   : > { %4221 = sst [smem:[#allocation10_spill]] %s3547_s28  ;;  %s46_s22 = sadd.s32 1, %s3551_s29 }
  0x1a   : > { %4222 = sst [smem:[#allocation11_spill]] %s3551_s29  ;;  %p589_p1 = scmp.ne.s32.totalorder %s3535_s26, %s3531_s25 }
  0x1b   : > { %4223 = sst [smem:[#allocation12_spill]] %s3555_s0  ;;  %p590_p2 = scmp.eq.s32.totalorder %s2943_s4, 3 }
  0x1c   : > { %s4281_s5 = smov (%p44_p0, %s43_s5), 0  ;;  %s4283_s22 = smov (!%p44_p0, %s46_s22), %s3551_s29 }
  0x1d   : > { %4224 = sst [smem:[#allocation13_spill]] %s4281_s5  ;;  %p3723_p3 = por %p590_p2, %p589_p1 }
  0x1e   : > { %p595_p4 = scmp.ne.s32.totalorder %s3531_s25, %s3527_s2  ;;  %p48_p5 = scmp.ge.s32.totalorder %s4283_s22, 2 }
  0x1f   : > { %s4225_s23 = scalar_select %p3723_p3, 1, 0 }
  0x20   : > { %p596_p6 = scmp.eq.s32.totalorder %s2944_s30, 3  ;;  %p2947_p7 = scmp.ge.s32.totalorder %s3555_s0, 1 }
  0x21   : > { %4226 = sst [smem:[#allocation14_spill]] %s4225_s23  ;;  %p744_p8 = scmp.lt.s32.totalorder %s3555_s0, 5 }
  0x22   : > { %s4285_s22 = smov (%p48_p5, %s4283_s22), 0  ;;  %p3733_p9 = por %p596_p6, %p595_p4 }
  0x23   : > { %4227 = sst [smem:[#allocation15_spill]] %s4285_s22  ;;  %p745_p10 = pnand %p2947_p7, %p744_p8 }
  0x24   : > { %s4228_s1 = scalar_select %p3733_p9, 1, 0 }
  0x25   : > { %s576_s24 = ssub.s32 %s3551_s29, %s4285_s22  ;;  %s579_s4 = sadd.s32 1, %s3535_s26 }
  0x26   : > { %4229 = sst [smem:[#allocation16_spill]] %s4228_s1  ;;  %p577_p11 = scmp.eq.s32.totalorder %s576_s24, 0 }
  0x27   : > { %748 = sbr.rel (%p745_p10) target bundleno = 2846 (0xb1e), region = 104 }
  0x28   : > { %s3741_s5 = scalar_select %p577_p11, %s3535_s26, %s579_s4  }
  0x2a   : > { %4230 = sst [smem:[#allocation17_spill]] %s3741_s5 }
  0x2e   : > { %p865_p12 = scmp.lt.s32.totalorder %s3543_s3, 1  ;;  %p869_p13 = scmp.lt.s32.totalorder %s3539_s27, 1 }
  0x2f   : > { %s4231_s29 = sld [smem:[#allocation22_spill]]  ;;  %s4232_s0 = sld [smem:[#allocation25_spill]] }
  0x30   : > { %s866_s28 = scalar_select %p865_p12, %s3543_s3, 1 }
  0x31   : > { %s3748_s2 = scalar_select %p869_p13, %s3539_s27, 1 }
  0x32   : > { %s2948_s24 = sshll.u32 %s866_s28, 3  ;;  %s4234_s19 = sld [smem:[#allocation26_spill]] }
  0x33   : > { %s3050_s26 = sshll.u32 %s3748_s2, 6  ;;  %s2951_s23 = sshll.u32 %s3748_s2, 2 }
  0x34   : > { %s4236_s22 = sld [smem:[#allocation27_spill]]  ;;  %s4238_s6 = sld [smem:[#allocation28_spill]] }
  0x35   : > { %s868_s5 = scalar_lea.vmem %s4231_s29, %s2948_s24  ;;  %s3757_s21 = scalar_lea.vmem %s4232_s0, %s3050_s26 }
  0x36   : > { %4233 = sst [smem:[#allocation18_spill]] %s3757_s21  ;;  %s4240_s7 = sld [smem:[#allocation29_spill]] }
  0x37   : > { %s4241_s8 = sld [smem:[#allocation30_spill]]  ;;  %s3053_s18 = sshll.u32 %s3748_s2, 4 }
  0x38   : > { %s3763_s27 = scalar_lea.vmem %s4234_s19, %s2951_s23  ;;  %s4242_s9 = sld [smem:[#allocation31_spill]] }
  0x39   : > { %4235 = sst [smem:[#allocation19_spill]] %s3763_s27  ;;  %s4243_s13 = sld [smem:[#allocation32_spill]] }
  0x3a   : > { %s3768_s29 = scalar_lea.vmem %s4236_s22, %s3050_s26  ;;  %s3773_s1 = scalar_lea.vmem %s4238_s6, %s2951_s23 }
  0x3b   : > { %4237 = sst [smem:[#allocation20_spill]] %s3768_s29  ;;  %s4244_s20 = sld [smem:[#allocation33_spill]] }
  0x3c   : > { %4239 = sst [smem:[#allocation21_spill]] %s3773_s1  ;;  %s3778_s21 = scalar_lea.vmem %s4240_s7, %s3050_s26 }
  0x3d   : > { %s3783_s3 = scalar_lea.vmem %s4241_s8, %s2951_s23  ;;  %s928_s23 = scalar_lea.vmem %s4179_s17, %s3748_s2 }
  0x3e   : > { %s3789_s27 = scalar_lea.vmem %s4242_s9, %s3053_s18  ;;  %s3055_s9 = sshll.u32 %s3748_s2, 5 }
  0x3f   : > { %s3806_s7 = scalar_lea.vmem %s4243_s13, %s3053_s18  ;;  %s3820_s26 = scalar_lea.vmem %s4177_s15, %s3055_s9 }
  0x40   : > { %s4245_s28 = sand.u32 1, %s3531_s25   ;;  %s4246_s8 = sld [smem:[#allocation8_spill]] }
  0x41   : > { %s931_s13 = scalar_lea.vmem %s4244_s20, %s3748_s2  ;;  %s3832_s22 = scalar_lea.vmem [#allocation3], %s4245_s28 }
  0x46   : > { %p2964_p0 = scmp.ne.s32.totalorder %s4246_s8, 0 }
  0x47   : > { %s4247_s6 = sld [smem:[#allocation23_spill]] (!%p2964_p0)  ;;  %v3557_v1 = vmov (!%p2964_p0), 0.0   ;;  %v937_v2 = vld [vmem:[%s868_s5] sm:$0xff] (!%p2964_p0)  ;;  %vm3558_vm0 = vmmov (!%p2964_p0), 0   ;;  %vm954_vm1 = vcmask (!%p2964_p0), 130048   ;;  %s4248_s29 = sld [smem:[#allocation24_spill]] (!%p2964_p0) }
  0x48   : > { %936 = sbr.rel (%p2964_p0) target bundleno = 296 (0x128), region = 108  ;;  %3129 = vmatprep.subr.bf16.mxu0 (!%p2964_p0), %v3557_v1  ;;  %3131 = vmatprep.mubr.msk.bf16.mxu0 (!%p2964_p0), %vm3558_vm0, %v3557_v1  ;;  %v938_v3 = vpack.c.bf16 (!%p2964_p0), %v937_v2, %v937_v2  ;;  %vm998_vm2 = vcmask (!%p2964_p0), 261120  }
  0x4d   : > { %v3408_v0 = vld [vmem:[%s4247_s6] sm:$0xff] (!%p2964_p0)  }
  0x4e   : > { %3130 = vmatpush3.bf16.msra.mxu0 (!%p2964_p0), %v3408_v0  ;;  %v2965_v4 = vld [vmem:[%s4248_s29] ss:$0 sm:$0xff] (!%p2964_p0) }
  0x51   : > { %3132 = vmatmul.mubr.msk.bf16.vlgmr.msra.gmra.mrb[0].mxu0 %vm954_vm1, %v938_v3 }
 0x124   : > { %v992_v5 = vpop.f32.mrb[0].mxu0 }
 0x125   : > { %v993_v6 = vadd.f32 %v2965_v4, %v992_v5  ;;  %v3133_v7 = vpop.f32.mrb[1].mxu0 }
 0x126   : > { %v995_v8 = vpop.f32.mrb[2].mxu0 }
 0x127   : > { %999 = vst.msk [vmem:[#allocation2] sm:$0xff] %vm998_vm2, %v993_v6  ;;  %v3134_v9 = vpop.f32.mrb[3].mxu0 }
 0x128 PF: > { %s4249_s6 = sld [smem:[#allocation18_spill]]  ;;  %v3559_v11 = vmov 0.0   ;;  %vm3560_vm3 = vmmov 0   ;;  %vm1058_vm4 = vcmask 261120   ;;  %s4250_s8 = sld [smem:[#allocation20_spill]]  ;;  %v3425_v29 = vld [vmem:[%s3778_s21] sm:$0xff]  }
 0x129   : > { %3135 = vmatprep.subr.bf16.mxu0 %v3559_v11  ;;  %3143 = vmatprep.subr.bf16.mxu1 %v3559_v11  ;;  %v3426_v30 = vld [vmem:[%s3778_s21 + $0x10] sm:$0xff]   ;;  %v3427_v31 = vld [vmem:[%s3778_s21 + $0x8] sm:$0xff]   ;;  %v3428_v32 = vld [vmem:[%s3778_s21 + $0x18] sm:$0xff]   ;;  %s4252_s5 = sld [smem:[#allocation19_spill]]  ;;  %vm1770_vm5 = vcmask 64512   ;;  %vm2014_vm6 = vcmask 1043456   ;;  %s4253_s1 = scalar_lea.vmem %s4172_s10, %s3748_s2 }
 0x12a   : > { %3139 = vmatprep.mubr.msk.bf16.mxu0 %vm3560_vm3, %v3559_v11  ;;  %3147 = vmatprep.mubr.msk.bf16.mxu1 %vm3560_vm3, %v3559_v11  ;;  %v3429_v33 = vld [vmem:[%s3778_s21 + $0x20] sm:$0xff]   ;;  %v3430_v34 = vld [vmem:[%s3778_s21 + $0x30] sm:$0xff]   ;;  %v3431_v35 = vld [vmem:[%s3778_s21 + $0x28] sm:$0xff]   ;;  %s4254_s30 = scalar_lea.vmem %s4173_s11, %s3748_s2  ;;  %s4255_s28 = scalar_lea.vmem %s4174_s12, %s3748_s2  ;;  %vm2542_vm7 = vcmask 523264  }
 0x12b   : > { %v3432_v36 = vld [vmem:[%s3778_s21 + $0x38] sm:$0xff]   ;;  %s4251_s21 = sld [smem:[#allocation21_spill]]  ;;  %s4256_s9 = scalar_lea.vmem %s4176_s14, %s3748_s2 }
 0x12e   : > { %v3409_v10 = vld [vmem:[%s4249_s6] sm:$0xff]   ;;  %v3410_v12 = vld [vmem:[%s4249_s6 + $0x10] sm:$0xff]   ;;  %v3411_v13 = vld [vmem:[%s4249_s6 + $0x8] sm:$0xff]  }
 0x12f   : > { %3136 = vmatpush3.bf16.msra.mxu0 %v3409_v10  ;;  %3144 = vmatpush3.bf16.msra.mxu1 %v3410_v12  ;;  %v3412_v14 = vld [vmem:[%s4249_s6 + $0x18] sm:$0xff]   ;;  %v3853_v15 = vld [vmem:[#allocation2] sm:$0xff]  ;;  %v3414_v18 = vld [vmem:[%s4249_s6 + $0x30] sm:$0xff]  }
 0x130   : > { %3137 = vmatprep.subr.bf16.mxu0 %v3559_v11  ;;  %3145 = vmatprep.subr.bf16.mxu1 %v3559_v11  ;;  %v3857_v16 = vpack.c.bf16 %v3853_v15, %v3853_v15  ;;  %v3413_v17 = vld [vmem:[%s4249_s6 + $0x20] sm:$0xff]   ;;  %v3415_v19 = vld [vmem:[%s4249_s6 + $0x28] sm:$0xff]   ;;  %v3416_v20 = vld [vmem:[%s4249_s6 + $0x38] sm:$0xff]   ;;  %s4257_s6 = scalar_lea.vmem %s4178_s16, %s3748_s2 }
 0x131   : > { %v3417_v21 = vld [vmem:[%s4250_s8] sm:$0xff]   ;;  %v3418_v22 = vld [vmem:[%s4250_s8 + $0x10] sm:$0xff]   ;;  %v3419_v23 = vld [vmem:[%s4250_s8 + $0x8] sm:$0xff]  }
 0x132   : > { %v3420_v24 = vld [vmem:[%s4250_s8 + $0x18] sm:$0xff]   ;;  %v3421_v25 = vld [vmem:[%s4250_s8 + $0x20] sm:$0xff]   ;;  %v3422_v26 = vld [vmem:[%s4250_s8 + $0x30] sm:$0xff]  }
 0x133   : > { %3138 = vmatpush3.bf16.msra.mxu0 %v3411_v13  ;;  %3146 = vmatpush3.bf16.msra.mxu1 %v3412_v14  ;;  %v3423_v27 = vld [vmem:[%s4250_s8 + $0x28] sm:$0xff]   ;;  %v3424_v28 = vld [vmem:[%s4250_s8 + $0x38] sm:$0xff]   ;;  %v2984_v53 = vld [vmem:[%s4251_s21] ss:$0 sm:$0xff] }
 0x134   : > { %3151 = vmatprep.subr.bf16.mxu0 %v3559_v11  ;;  %3159 = vmatprep.subr.bf16.mxu1 %v3559_v11  ;;  %v2985_v54 = vld [vmem:[%s4251_s21 + $0x1] ss:$0 sm:$0xff]  ;;  %v2968_v1 = vld [vmem:[%s4252_s5] ss:$0 sm:$0xff]  ;;  %v2986_v7 = vld [vmem:[%s4251_s21 + $0x2] ss:$0 sm:$0xff] }
 0x135   : > { %v2969_v4 = vld [vmem:[%s4252_s5 + $0x1] ss:$0 sm:$0xff]  ;;  %v2987_v9 = vld [vmem:[%s4251_s21 + $0x3] ss:$0 sm:$0xff] }
 0x136   : > { %3140 = vmatmul.mubr.msk.bf16.vlgmr.msra.gmra.mrb[0].mxu0 %vm1058_vm4, %v3857_v16  ;;  %3148 = vmatmul.mubr.msk.bf16.vlgmr.msra.gmra.mrb[0].mxu1 %vm1058_vm4, %v3857_v16 }
 0x137   : > { %3152 = vmatpush3.bf16.msra.mxu0 %v3413_v17  ;;  %3160 = vmatpush3.bf16.msra.mxu1 %v3414_v18 }
 0x138   : > { %3153 = vmatprep.subr.bf16.mxu0 %v3559_v11  ;;  %3161 = vmatprep.subr.bf16.mxu1 %v3559_v11 }
 0x139   : > { %3155 = vmatprep.mubr.msk.bf16.mxu0 %vm3560_vm3, %v3559_v11  ;;  %3163 = vmatprep.mubr.msk.bf16.mxu1 %vm3560_vm3, %v3559_v11 }
 0x13b   : > { %3154 = vmatpush3.bf16.msra.mxu0 %v3415_v19  ;;  %3162 = vmatpush3.bf16.msra.mxu1 %v3416_v20 }
 0x13c   : > { %3167 = vmatprep.subr.bf16.mxu0 %v3559_v11  ;;  %3175 = vmatprep.subr.bf16.mxu1 %v3559_v11 }
 0x13e   : > { %3156 = vmatmul.mubr.msk.bf16.vlgmr.msra.gmra.mrb[4].mxu0 %vm1058_vm4, %v3857_v16  ;;  %3164 = vmatmul.mubr.msk.bf16.vlgmr.msra.gmra.mrb[4].mxu1 %vm1058_vm4, %v3857_v16 }
 0x13f   : > { %3168 = vmatpush3.bf16.msra.mxu0 %v3417_v21  ;;  %3176 = vmatpush3.bf16.msra.mxu1 %v3418_v22 }
 0x140   : > { %3169 = vmatprep.subr.bf16.mxu0 %v3559_v11  ;;  %3177 = vmatprep.subr.bf16.mxu1 %v3559_v11 }
 0x141   : > { %3171 = vmatprep.mubr.msk.bf16.mxu0 %vm3560_vm3, %v3559_v11  ;;  %3179 = vmatprep.mubr.msk.bf16.mxu1 %vm3560_vm3, %v3559_v11 }
 0x143   : > { %3170 = vmatpush3.bf16.msra.mxu0 %v3419_v23  ;;  %3178 = vmatpush3.bf16.msra.mxu1 %v3420_v24 }
 0x144   : > { %3183 = vmatprep.subr.bf16.mxu0 %v3559_v11  ;;  %3191 = vmatprep.subr.bf16.mxu1 %v3559_v11 }
 0x146   : > { %3172 = vmatmul.mubr.msk.bf16.vlgmr.msra.gmra.mrb[8].mxu0 %vm1058_vm4, %v3857_v16  ;;  %3180 = vmatmul.mubr.msk.bf16.vlgmr.msra.gmra.mrb[8].mxu1 %vm1058_vm4, %v3857_v16 }
 0x147   : > { %3184 = vmatpush3.bf16.msra.mxu0 %v3421_v25  ;;  %3192 = vmatpush3.bf16.msra.mxu1 %v3422_v26  ;;  %v2970_v25 = vld [vmem:[%s4252_s5 + $0x2] ss:$0 sm:$0xff] }
 0x148   : > { %3185 = vmatprep.subr.bf16.mxu0 %v3559_v11  ;;  %3193 = vmatprep.subr.bf16.mxu1 %v3559_v11 }
 0x149   : > { %3187 = vmatprep.mubr.msk.bf16.mxu0 %vm3560_vm3, %v3559_v11  ;;  %3195 = vmatprep.mubr.msk.bf16.mxu1 %vm3560_vm3, %v3559_v11 }
 0x14b   : > { %3186 = vmatpush3.bf16.msra.mxu0 %v3423_v27  ;;  %3194 = vmatpush3.bf16.msra.mxu1 %v3424_v28  ;;  %v2971_v28 = vld [vmem:[%s4252_s5 + $0x3] ss:$0 sm:$0xff] }
 0x14c   : > { %3199 = vmatprep.subr.bf16.mxu0 %v3559_v11  ;;  %3207 = vmatprep.subr.bf16.mxu1 %v3559_v11 }
 0x14e   : > { %3188 = vmatmul.mubr.msk.bf16.vlgmr.msra.gmra.mrb[12].mxu0 %vm1058_vm4, %v3857_v16  ;;  %3196 = vmatmul.mubr.msk.bf16.vlgmr.msra.gmra.mrb[12].mxu1 %vm1058_vm4, %v3857_v16 }
 0x14f   : > { %3200 = vmatpush3.bf16.msra.mxu0 %v3425_v29  ;;  %3203 = vmatprep.mubr.msk.bf16.mxu0 %vm3560_vm3, %v3559_v11 }
 0x150   : > { %3201 = vmatprep.subr.bf16.mxu0 %v3559_v11  ;;  %3211 = vmatprep.mubr.msk.bf16.mxu1 %vm3560_vm3, %v3559_v11 }
 0x151   : > { %3208 = vmatpush3.bf16.msra.mxu1 %v3426_v30 }
 0x152   : > { %3209 = vmatprep.subr.bf16.mxu1 %v3559_v11 }
 0x153   : > { %3202 = vmatpush3.bf16.msra.mxu0 %v3427_v31 }
 0x154   : > { %3215 = vmatprep.subr.bf16.mxu0 %v3559_v11 }
 0x155   : > { %3210 = vmatpush3.bf16.msra.mxu1 %v3428_v32 }
 0x156   : > { %3204 = vmatmul.mubr.msk.bf16.vlgmr.msra.gmra.mrb[16].mxu0 %vm1058_vm4, %v3857_v16  ;;  %3223 = vmatprep.subr.bf16.mxu1 %v3559_v11 }
 0x157   : > { %3219 = vmatprep.mubr.msk.bf16.mxu0 %vm3560_vm3, %v3559_v11  ;;  %3216 = vmatpush3.bf16.msra.mxu0 %v3429_v33 }
 0x158   : > { %3212 = vmatmul.mubr.msk.bf16.vlgmr.msra.gmra.mrb[16].mxu1 %vm1058_vm4, %v3857_v16  ;;  %3217 = vmatprep.subr.bf16.mxu0 %v3559_v11 }
 0x159   : > { %3224 = vmatpush3.bf16.msra.mxu1 %v3430_v34  ;;  %3227 = vmatprep.mubr.msk.bf16.mxu1 %vm3560_vm3, %v3559_v11 }
 0x15a   : > { %3225 = vmatprep.subr.bf16.mxu1 %v3559_v11 }
 0x15b   : > { %3218 = vmatpush3.bf16.msra.mxu0 %v3431_v35  ;;  %v3000_v35 = vld [vmem:[%s3783_s3] ss:$0 sm:$0xff] }
 0x15c   : > { %3231 = vmatprep.subr.bf16.mxu0 %v3559_v11 }
 0x15d   : > { %3226 = vmatpush3.bf16.msra.mxu1 %v3432_v36 }
 0x15e   : > { %3237 = vmatprep.subr.bf16.mxu1 %v3559_v11  ;;  %3220 = vmatmul.mubr.msk.bf16.vlgmr.msra.gmra.mrb[20].mxu0 %vm1058_vm4, %v3857_v16 }
 0x15f   : > { %3233 = vmatprep.mubr.msk.bf16.mxu0 %vm3560_vm3, %v3559_v11 }
 0x160   : > { %3228 = vmatmul.mubr.msk.bf16.vlgmr.msra.gmra.mrb[20].mxu1 %vm1058_vm4, %v3857_v16 }
 0x161   : > { %3239 = vmatprep.mubr.msk.bf16.mxu1 %vm3560_vm3, %v3559_v11 }
 0x209   : > { %v1096_v37 = vpop.f32.mrb[0].mxu0  ;;  %v1148_v39 = vpop.f32.mrb[0].mxu1 }
 0x20a   : > { %v3141_v38 = vpop.f32.mrb[1].mxu0  ;;  %v3149_v41 = vpop.f32.mrb[1].mxu1  ;;  %v1097_v8 = vadd.f32 %v2968_v1, %v1096_v37  ;;  %v1149_v10 = vadd.f32 %v2969_v4, %v1148_v39  ;;  %v3001_v37 = vld [vmem:[%s3783_s3 + $0x1] ss:$0 sm:$0xff] }
 0x20b   : > { %v1099_v40 = vpop.f32.mrb[2].mxu0  ;;  %v1151_v43 = vpop.f32.mrb[2].mxu1 }
 0x20c   : > { %v3142_v42 = vpop.f32.mrb[3].mxu0  ;;  %v3150_v44 = vpop.f32.mrb[3].mxu1  ;;  %v1762_v20 = vpack.c.bf16 %v1097_v8, %v1097_v8  ;;  %v1763_v24 = vpack.c.bf16 %v1149_v10, %v1149_v10 }
 0x211   : > { %v1200_v45 = vpop.f32.mrb[4].mxu0  ;;  %v1252_v47 = vpop.f32.mrb[4].mxu1 }
 0x212   : > { %v3157_v46 = vpop.f32.mrb[5].mxu0  ;;  %v3165_v49 = vpop.f32.mrb[5].mxu1  ;;  %v1201_v31 = vadd.f32 %v2970_v25, %v1200_v45  ;;  %v1253_v32 = vadd.f32 %v2971_v28, %v1252_v47 }
 0x213   : > { %v1203_v48 = vpop.f32.mrb[6].mxu0  ;;  %v1255_v51 = vpop.f32.mrb[6].mxu1 }
 0x214   : > { %v3158_v50 = vpop.f32.mrb[7].mxu0  ;;  %v3166_v52 = vpop.f32.mrb[7].mxu1  ;;  %v1764_v33 = vpack.c.bf16 %v1201_v31, %v1201_v31  ;;  %v1765_v34 = vpack.c.bf16 %v1253_v32, %v1253_v32 }
 0x219   : > { %v1348_v55 = vpop.f32.mrb[8].mxu0  ;;  %v1400_v57 = vpop.f32.mrb[8].mxu1 }
 0x21a   : > { %v1349_v56 = vadd.f32 %v2984_v53, %v1348_v55  ;;  %v3173_v58 = vpop.f32.mrb[9].mxu0  ;;  %v1401_v59 = vadd.f32 %v2985_v54, %v1400_v57  ;;  %v3181_v61 = vpop.f32.mrb[9].mxu1 }
 0x21b   : > { %v1351_v60 = vpop.f32.mrb[10].mxu0  ;;  %v1403_v0 = vpop.f32.mrb[10].mxu1 }
 0x21c   : > { %v1766_v62 = vpack.c.bf16 %v1349_v56, %v1349_v56  ;;  %v3174_v63 = vpop.f32.mrb[11].mxu0  ;;  %v1767_v2 = vpack.c.bf16 %v1401_v59, %v1401_v59  ;;  %v3182_v3 = vpop.f32.mrb[11].mxu1 }
 0x21e   : > { %v1775_v5 = vsel %vm1770_vm5, %v1766_v62, 0  ;;  %v1821_v6 = vsel %vm1770_vm5, %v1767_v2, 0 }
 0x21f   : > { %3232 = vmatpush3.bf16.xpose.msra.mxu0 %v1775_v5  ;;  %3238 = vmatpush3.bf16.xpose.msra.mxu1 %v1821_v6 }
 0x220   : > { %3243 = vmatprep.subr.bf16.mxu0 %v3559_v11  ;;  %3249 = vmatprep.subr.bf16.mxu1 %v3559_v11 }
 0x221   : > { %v1452_v12 = vpop.f32.mrb[12].mxu0  ;;  %v1504_v14 = vpop.f32.mrb[12].mxu1 }
 0x222   : > { %v1453_v13 = vadd.f32 %v2986_v7, %v1452_v12  ;;  %v3189_v16 = vpop.f32.mrb[13].mxu0  ;;  %v1505_v17 = vadd.f32 %v2987_v9, %v1504_v14  ;;  %v3197_v19 = vpop.f32.mrb[13].mxu1 }
 0x223   : > { %v1455_v18 = vpop.f32.mrb[14].mxu0  ;;  %v1507_v23 = vpop.f32.mrb[14].mxu1 }
 0x224   : > { %v1768_v21 = vpack.c.bf16 %v1453_v13, %v1453_v13  ;;  %v3190_v22 = vpop.f32.mrb[15].mxu0  ;;  %v1769_v26 = vpack.c.bf16 %v1505_v17, %v1505_v17  ;;  %v3198_v27 = vpop.f32.mrb[15].mxu1 }
 0x226   : > { %v1867_v29 = vsel %vm1770_vm5, %v1768_v21, 0  ;;  %3234 = vmatmul.mubr.msk.bf16.vlgmr.msra.gmra.mrb[24].mxu0 %vm1770_vm5, %v1762_v20  ;;  %v1913_v30 = vsel %vm1770_vm5, %v1769_v26, 0  ;;  %3240 = vmatmul.mubr.msk.bf16.vlgmr.msra.gmra.mrb[24].mxu1 %vm1770_vm5, %v1763_v24 }
 0x227   : > { %3244 = vmatpush3.bf16.xpose.msra.mxu0 %v1867_v29  ;;  %3250 = vmatpush3.bf16.xpose.msra.mxu1 %v1913_v30 }
 0x228   : > { %3245 = vmatprep.mubr.msk.bf16.mxu0 %vm3560_vm3, %v3559_v11  ;;  %3251 = vmatprep.mubr.msk.bf16.mxu1 %vm3560_vm3, %v3559_v11 }
 0x229   : > { %3255 = vmatprep.subr.bf16.mxu0 %v3559_v11  ;;  %3261 = vmatprep.subr.bf16.mxu1 %v3559_v11  ;;  %v1600_v36 = vpop.f32.mrb[16].mxu0 }
 0x22a   : > { %v1601_v38 = vadd.f32 %v3000_v35, %v1600_v36  ;;  %v3205_v39 = vpop.f32.mrb[17].mxu0 }
 0x22b   : > { %v1603_v40 = vpop.f32.mrb[18].mxu0  ;;  %v1652_v41 = vpop.f32.mrb[16].mxu1 }
 0x22c   : > { %v2007_v42 = vpack.c.bf16 %v1601_v38, %v1601_v38  ;;  %v3206_v43 = vpop.f32.mrb[19].mxu0  ;;  %v1653_v44 = vadd.f32 %v3001_v37, %v1652_v41  ;;  %v3213_v45 = vpop.f32.mrb[17].mxu1 }
 0x22d   : > { %v1655_v46 = vpop.f32.mrb[18].mxu1  ;;  %v3002_v43 = vld [vmem:[%s3783_s3 + $0x2] ss:$0 sm:$0xff] }
 0x22e   : > { %3246 = vmatmul.mubr.msk.bf16.vlgmr.msra.gmra.mrb[28].mxu0 %vm1770_vm5, %v1764_v33  ;;  %3252 = vmatmul.mubr.msk.bf16.vlgmr.msra.gmra.mrb[28].mxu1 %vm1770_vm5, %v1765_v34  ;;  %v2016_v47 = vsel %vm2014_vm6, %v2007_v42, 0  ;;  %v2008_v48 = vpack.c.bf16 %v1653_v44, %v1653_v44  ;;  %v3214_v49 = vpop.f32.mrb[19].mxu1  ;;  %v3003_v46 = vld [vmem:[%s3783_s3 + $0x3] ss:$0 sm:$0xff]  ;;  %s4259_s3 = sld [smem:[#allocation8_spill]] }
 0x22f   : > { %3257 = vmatprep.mubr.msk.bf16.mxu0 %vm3560_vm3, %v3559_v11  ;;  %3263 = vmatprep.mubr.msk.bf16.mxu1 %vm3560_vm3, %v3559_v11 }
 0x230   : > { %3256 = vmatpush3.bf16.msra.mxu0 %v2016_v47  ;;  %v2062_v50 = vsel %vm2014_vm6, %v2008_v48, 0 }
 0x231   : > { %3267 = vmatprep.subr.bf16.mxu0 %v3559_v11  ;;  %3262 = vmatpush3.bf16.msra.mxu1 %v2062_v50  ;;  %v3983_v51 = vpop.f32.mrb[20].mxu0 }
 0x232   : > { %3273 = vmatprep.subr.bf16.mxu1 %v3559_v11  ;;  %v3221_v53 = vpop.f32.mrb[21].mxu0  ;;  %v1705_v44 = vadd.f32 %v3002_v43, %v3983_v51 }
 0x233   : > { %v3985_v52 = vpop.f32.mrb[20].mxu1  ;;  %v1707_v55 = vpop.f32.mrb[22].mxu0 }
 0x234   : > { %v3229_v54 = vpop.f32.mrb[21].mxu1  ;;  %v3222_v57 = vpop.f32.mrb[23].mxu0  ;;  %v2009_v48 = vpack.c.bf16 %v1705_v44, %v1705_v44  ;;  %v1757_v49 = vadd.f32 %v3003_v46, %v3985_v52  ;;  %v2200_v52 = vld [vmem:[%s3789_s27] sm:$0xf]  ;;  %p3043_p1 = scmp.ne.s32.totalorder %s4259_s3, 1 }
 0x235   : > { %v1759_v56 = vpop.f32.mrb[22].mxu1  ;;  %s4260_s0 = sld [smem:[#allocation34_spill]] (!%p3043_p1)  ;;  %vm3562_vm8 = vmmov (!%p3043_p1), 0   ;;  %s4262_s19 = sld [smem:[#allocation35_spill]] (!%p3043_p1)  ;;  %vm2691_vm9 = vcmask (!%p3043_p1), 57344  }
 0x236   : > { %v3230_v58 = vpop.f32.mrb[23].mxu1  ;;  %v2108_v56 = vsel %vm2014_vm6, %v2009_v48, 0  ;;  %v2010_v57 = vpack.c.bf16 %v1757_v49, %v1757_v49 }
 0x2f9   : > { %v1811_v59 = vpop.f32.mrb[24].mxu0  ;;  %v1857_v61 = vpop.f32.mrb[24].mxu1 }
 0x2fa   : > { %v1955_v60 = vmul.f32 0.35355338, %v1811_v59  ;;  %v3235_v62 = vpop.f32.mrb[25].mxu0  ;;  %v3241_v63 = vpop.f32.mrb[25].mxu1  ;;  %v1956_v1 = vmul.f32 0.35355338, %v1857_v61 }
 0x2fb   : > { %v1814_v0 = vpop.f32.mrb[26].mxu0  ;;  %v1860_v2 = vpop.f32.mrb[26].mxu1  ;;  %v2208_v63 = vsel %vm2014_vm6, %v2200_v52, 0 }
 0x2fc   : > { %v3236_v3 = vpop.f32.mrb[27].mxu0  ;;  %v1959_v4 = vsel %vm1770_vm5, %v1955_v60, -inf  ;;  %v3242_v5 = vpop.f32.mrb[27].mxu1  ;;  %v1962_v6 = vsel %vm1770_vm5, %v1956_v1, -inf }
 0x2fd   : > { %1960 = vmax.xlane.f32.xlu0 %v1959_v4  ;;  %v2201_v3 = vld [vmem:[%s3789_s27 + $0x4] sm:$0xf]  ;;  %v2202_v5 = vld [vmem:[%s3789_s27 + $0x8] sm:$0xf] }
 0x2fe   : > { %v2254_v4 = vsel %vm2014_vm6, %v2201_v3, 0 }
 0x301   : > { %1963 = vmax.xlane.f32.xlu0 %v1962_v6  ;;  %v1903_v7 = vpop.f32.mrb[28].mxu0  ;;  %v1949_v8 = vpop.f32.mrb[28].mxu1 }
 0x302   : > { %v1957_v9 = vmul.f32 0.35355338, %v1903_v7  ;;  %v3247_v10 = vpop.f32.mrb[29].mxu0  ;;  %v3253_v12 = vpop.f32.mrb[29].mxu1  ;;  %v1958_v14 = vmul.f32 0.35355338, %v1949_v8 }
 0x303   : > { %v1906_v13 = vpop.f32.mrb[30].mxu0  ;;  %v1952_v16 = vpop.f32.mrb[30].mxu1  ;;  %v2203_v12 = vld [vmem:[%s3789_s27 + $0xc] sm:$0xf] }
 0x304   : > { %v3248_v17 = vpop.f32.mrb[31].mxu0  ;;  %v1965_v18 = vsel %vm1770_vm5, %v1957_v9, -inf  ;;  %v3254_v19 = vpop.f32.mrb[31].mxu1  ;;  %v1968_v20 = vsel %vm1770_vm5, %v1958_v14, -inf }
 0x305   : > { %1966 = vmax.xlane.f32.xlu1 %v1965_v18  ;;  %v2346_v18 = vsel %vm2014_vm6, %v2203_v12, 0 }
 0x309   : > { %1969 = vmax.xlane.f32.xlu1 %v1968_v20 }
 0x38a   : > { %v1961_v21 = vpop.xlane.xlu0 %1960 }
 0x38b   : > { %v1971_v22 = vsub.f32 %v1955_v60, %v1961_v21  ;;  %v2154_v60 = vsel %vm2014_vm6, %v2010_v57, 0 }
 0x38d   : > { %v1975_v23 = vmul.f32 1.442695, %v1971_v22 }
 0x38e   : > { %v1964_v24 = vpop.xlane.xlu0 %1963 }
 0x38f   : > { %3439 = vpow2.f32 %v1975_v23  ;;  %v1972_v25 = vsub.f32 %v1956_v1, %v1964_v24 }
 0x391   : > { %v1977_v26 = vmul.f32 1.442695, %v1972_v25 }
 0x392   : > { %v1967_v27 = vpop.xlane.xlu1 %1966 }
 0x393   : > { %3441 = vpow2.f32 %v1977_v26  ;;  %v1973_v28 = vsub.f32 %v1957_v9, %v1967_v27  ;;  %v2300_v9 = vsel %vm2014_vm6, %v2202_v5, 0 }
 0x395   : > { %v1979_v29 = vmul.f32 1.442695, %v1973_v28 }
 0x396   : > { %v1970_v30 = vpop.xlane.xlu1 %1969 }
 0x397   : > { %3443 = vpow2.f32 %v1979_v29  ;;  %v1974_v31 = vsub.f32 %v1958_v14, %v1970_v30 }
 0x399   : > { %v3440_v32 = vpop.eup %3439  ;;  %v1981_v33 = vmul.f32 1.442695, %v1974_v31 }
 0x39a   : > { %v1983_v34 = vsel %vm1770_vm5, %v3440_v32, 0.0 }
 0x39b   : > { %3445 = vpow2.f32 %v1981_v33  ;;  %1984 = vadd.xlane.f32.xlu0 %v1983_v34 }
 0x39d   : > { %v3442_v35 = vpop.eup %3441 }
 0x39e   : > { %v1986_v36 = vsel %vm1770_vm5, %v3442_v35, 0.0 }
 0x39f   : > { %1987 = vadd.xlane.f32.xlu1 %v1986_v36 }
 0x3a1   : > { %v3444_v37 = vpop.eup %3443 }
 0x3a2   : > { %v1989_v38 = vsel %vm1770_vm5, %v3444_v37, 0.0 }
 0x3a3   : > { %1990 = vadd.xlane.f32.xlu0 %v1989_v38 }
 0x3a5   : > { %v3446_v39 = vpop.eup %3445 }
 0x3a6   : > { %v1992_v40 = vsel %vm1770_vm5, %v3446_v39, 0.0 }
 0x3a7   : > { %1993 = vadd.xlane.f32.xlu1 %v1992_v40 }
 0x428   : > { %v1985_v41 = vpop.xlane.xlu0 %1984 }
 0x429   : > { %3447 = vrcp.f32 %v1985_v41 }
 0x42c   : > { %v1988_v42 = vpop.xlane.xlu1 %1987 }
 0x42d   : > { %3449 = vrcp.f32 %v1988_v42 }
 0x430   : > { %v1991_v45 = vpop.xlane.xlu0 %1990 }
 0x431   : > { %3451 = vrcp.f32 %v1991_v45 }
 0x433   : > { %v3448_v47 = vpop.eup %3447 }
 0x434   : > { %v1999_v50 = vmul.f32 %v3448_v47, %v3440_v32  ;;  %v1994_v53 = vpop.xlane.xlu1 %1993 }
 0x435   : > { %3453 = vrcp.f32 %v1994_v53 }
 0x436   : > { %v2003_v54 = vpack.c.bf16 %v1999_v50, %v1999_v50  ;;  %v3028_v50 = vld [vmem:[%s4253_s1] ss:$0 sm:$0xff] }
 0x437   : > { %v3450_v55 = vpop.eup %3449 }
 0x438   : > { %v2000_v58 = vmul.f32 %v3450_v55, %v3442_v35  ;;  %3258 = vmatmul.mubr.msk.bf16.vlgmr.msra.gmra.mrb[32].mxu0 %vm1770_vm5, %v2003_v54 }
 0x439   : > { %3268 = vmatpush3.bf16.msra.mxu0 %v2108_v56  ;;  %3269 = vmatprep.mubr.msk.bf16.mxu0 %vm3560_vm3, %v3559_v11 }
 0x43a   : > { %v2004_v51 = vpack.c.bf16 %v2000_v58, %v2000_v58  ;;  %3279 = vmatprep.subr.bf16.mxu0 %v3559_v11 }
 0x43b   : > { %v3452_v59 = vpop.eup %3451 }
 0x43c   : > { %v2001_v61 = vmul.f32 %v3452_v59, %v3444_v37  ;;  %3264 = vmatmul.mubr.msk.bf16.vlgmr.msra.gmra.mrb[32].mxu1 %vm1770_vm5, %v2004_v51 }
 0x43d   : > { %3274 = vmatpush3.bf16.msra.mxu1 %v2154_v60  ;;  %3275 = vmatprep.mubr.msk.bf16.mxu1 %vm3560_vm3, %v3559_v11 }
 0x43e   : > { %v2005_v62 = vpack.c.bf16 %v2001_v61, %v2001_v61  ;;  %3285 = vmatprep.subr.bf16.mxu1 %v3559_v11 }
 0x43f   : > { %v3454_v0 = vpop.eup %3453 }
 0x440   : > { %v2002_v1 = vmul.f32 %v3454_v0, %v3446_v39  ;;  %3270 = vmatmul.mubr.msk.bf16.vlgmr.msra.gmra.mrb[36].mxu0 %vm1770_vm5, %v2005_v62  ;;  %v3434_v0 = vld [vmem:[%s3806_s7 + $0x8] sm:$0xff]  }
 0x441   : > { %3280 = vmatpush3.bf16.msra.mxu0 %v2208_v63  ;;  %3281 = vmatprep.mubr.msk.bf16.mxu0 %vm3560_vm3, %v3559_v11  ;;  %v3433_v63 = vld [vmem:[%s3806_s7] sm:$0xff]  }
 0x442   : > { %v2006_v2 = vpack.c.bf16 %v2002_v1, %v2002_v1  ;;  %3291 = vmatprep.subr.bf16.mxu0 %v3559_v11  ;;  %v3436_v1 = vld [vmem:[%s3820_s26 + $0x8] sm:$0xff]  }
 0x444   : > { %3276 = vmatmul.mubr.msk.bf16.vlgmr.msra.gmra.mrb[36].mxu1 %vm1770_vm5, %v2006_v2 }
 0x445   : > { %3287 = vmatprep.mubr.msk.bf16.mxu1 %vm3560_vm3, %v3559_v11  ;;  %3286 = vmatpush3.bf16.msra.mxu1 %v2254_v4 }
 0x446   : > { %3297 = vmatprep.subr.bf16.mxu1 %v3559_v11 }
 0x50b   : > { %v2052_v6 = vpop.f32.mrb[32].mxu0 }
 0x50c   : > { %v2196_v7 = vpack.c.bf16 %v2052_v6, %v2052_v6  ;;  %v3259_v8 = vpop.f32.mrb[33].mxu0  ;;  %v3029_v6 = vld [vmem:[%s4254_s30] ss:$0 sm:$0xff]  ;;  %s4261_s30 = smov (!%p3043_p1), %s4260_s0 }
 0x50d   : > { %v2055_v10 = vpop.f32.mrb[34].mxu0  ;;  %v3030_v8 = vld [vmem:[%s4255_s28] ss:$0 sm:$0xff] }
 0x50e   : > { %v3260_v13 = vpop.f32.mrb[35].mxu0  ;;  %3282 = vmatmul.mubr.msk.bf16.vlgmr.msra.gmra.mrb[40].mxu0 %vm1770_vm5, %v2196_v7 }
 0x50f   : > { %v2098_v14 = vpop.f32.mrb[32].mxu1  ;;  %3292 = vmatpush3.bf16.msra.mxu0 %v2300_v9  ;;  %3293 = vmatprep.mubr.msk.bf16.mxu0 %vm3560_vm3, %v3559_v11  ;;  %v3437_v13 = vld [vmem:[%s3820_s26 + $0x10] sm:$0xff]  }
 0x510   : > { %v2197_v16 = vpack.c.bf16 %v2098_v14, %v2098_v14  ;;  %v3265_v17 = vpop.f32.mrb[33].mxu1  ;;  %3303 = vmatprep.subr.bf16.mxu0 %v3559_v11  ;;  %v3438_v14 = vld [vmem:[%s3820_s26 + $0x18] sm:$0xff]  }
 0x511   : > { %v2101_v19 = vpop.f32.mrb[34].mxu1 }
 0x512   : > { %v3266_v20 = vpop.f32.mrb[35].mxu1  ;;  %3288 = vmatmul.mubr.msk.bf16.vlgmr.msra.gmra.mrb[40].mxu1 %vm1770_vm5, %v2197_v16  ;;  %v3031_v16 = vld [vmem:[%s4256_s9] ss:$0 sm:$0xff] }
 0x513   : > { %v2144_v21 = vpop.f32.mrb[36].mxu0  ;;  %3298 = vmatpush3.bf16.msra.mxu1 %v2346_v18  ;;  %3299 = vmatprep.mubr.msk.bf16.mxu1 %vm3560_vm3, %v3559_v11 }
 0x514   : > { %v2198_v22 = vpack.c.bf16 %v2144_v21, %v2144_v21  ;;  %v3271_v23 = vpop.f32.mrb[37].mxu0  ;;  %3311 = vmatprep.subr.bf16.mxu1 %v3559_v11 }
 0x515   : > { %v2147_v24 = vpop.f32.mrb[38].mxu0 }
 0x516   : > { %v3272_v25 = vpop.f32.mrb[39].mxu0  ;;  %3294 = vmatmul.mubr.msk.bf16.vlgmr.msra.gmra.mrb[44].mxu0 %vm1770_vm5, %v2198_v22 }
 0x517   : > { %v2190_v26 = vpop.f32.mrb[36].mxu1  ;;  %3307 = vmatprep.mubr.msk.bf16.mxu0 %vm3560_vm3, %v3559_v11  ;;  %3304 = vmatpush3.bf16.msra.mxu0 %v3433_v63 }
 0x518   : > { %v2199_v27 = vpack.c.bf16 %v2190_v26, %v2190_v26  ;;  %v3277_v28 = vpop.f32.mrb[37].mxu1  ;;  %3305 = vmatprep.subr.bf16.mxu0 %v3559_v11 }
 0x519   : > { %v2193_v29 = vpop.f32.mrb[38].mxu1 }
 0x51a   : > { %v3278_v30 = vpop.f32.mrb[39].mxu1  ;;  %3300 = vmatmul.mubr.msk.bf16.vlgmr.msra.gmra.mrb[44].mxu1 %vm1770_vm5, %v2199_v27 }
 0x51b   : > { %3319 = vmatprep.mubr.msk.bf16.mxu1 %vm3560_vm3, %v3559_v11  ;;  %3306 = vmatpush3.bf16.msra.mxu0 %v3434_v0 }
 0x5e1   : > { %v2244_v31 = vpop.f32.mrb[40].mxu0 }
 0x5e2   : > { %v3283_v32 = vpop.f32.mrb[41].mxu0  ;;  %v2388_v36 = vsel %vm1058_vm4, %v2244_v31, 0.0 }
 0x5e3   : > { %v2247_v33 = vpop.f32.mrb[42].mxu0 }
 0x5e4   : > { %v3284_v34 = vpop.f32.mrb[43].mxu0 }
 0x5e5   : > { %v2290_v35 = vpop.f32.mrb[40].mxu1 }
 0x5e6   : > { %v2389_v37 = vsel %vm1058_vm4, %v2290_v35, 0.0  ;;  %v3289_v38 = vpop.f32.mrb[41].mxu1 }
 0x5e7   : > { %v2390_v39 = vadd.f32 %v2389_v37, %v2388_v36  ;;  %v2293_v40 = vpop.f32.mrb[42].mxu1 }
 0x5e8   : > { %v3290_v41 = vpop.f32.mrb[43].mxu1  ;;  %v3041_v40 = vld [vmem:[%s928_s23] ss:$0 sm:$0xff] }
 0x5e9   : > { %v2336_v42 = vpop.f32.mrb[44].mxu0 }
 0x5ea   : > { %v2391_v43 = vsel %vm1058_vm4, %v2336_v42, 0.0  ;;  %v3295_v44 = vpop.f32.mrb[45].mxu0  ;;  %v3042_v42 = vld [vmem:[%s931_s13] ss:$0 sm:$0xff] }
 0x5eb   : > { %v2392_v45 = vadd.f32 %v2391_v43, %v2390_v39  ;;  %v2339_v46 = vpop.f32.mrb[46].mxu0 }
 0x5ec   : > { %v3296_v47 = vpop.f32.mrb[47].mxu0  ;;  %v3561_v46 = vmov (!%p3043_p1), 0.0  }
 0x5ed   : > { %v2382_v48 = vpop.f32.mrb[44].mxu1  ;;  %3323 = vmatprep.subr.bf16.mxu0 (!%p3043_p1), %v3561_v46  ;;  %v3460_v47 = vld [vmem:[%s4261_s30 + $0x8] sm:$0xff] (!%p3043_p1)  }
 0x5ee   : > { %v2393_v49 = vsel %vm1058_vm4, %v2382_v48, 0.0  ;;  %v3301_v53 = vpop.f32.mrb[45].mxu1 }
 0x5ef   : > { %v2394_v54 = vadd.f32 %v2393_v49, %v2392_v45  ;;  %v2385_v55 = vpop.f32.mrb[46].mxu1  ;;  %v3459_v45 = vld [vmem:[%s4260_s0] sm:$0xff] (!%p3043_p1)  }
 0x5f0   : > { %v3302_v56 = vpop.f32.mrb[47].mxu1 }
 0x5f1   : > { %v2402_v57 = vadd.f32 %v3028_v50, %v2394_v54 }
 0x5f3   : > { %v2403_v58 = vadd.f32 %v2402_v57, %v3853_v15  ;;  %v3435_v15 = vld [vmem:[%s3820_s26] sm:$0xff]  }
 0x5f4   : > { %3312 = vmatpush3.bf16.msra.mxu1 %v3435_v15 }
 0x5f5   : > { %v2406_v51 = vsel %vm1058_vm4, %v2403_v58, 0.0  ;;  %3313 = vmatprep.subr.bf16.mxu1 %v3559_v11 }
 0x5f6   : > { %2407 = vadd.xlane.f32.xlu0 %v2406_v51  ;;  %v2635_v51 = vld [vmem:[%s4262_s19] sm:$0x1] (!%p3043_p1) }
 0x5f8   : > { %3314 = vmatpush3.bf16.msra.mxu1 %v3436_v1 }
 0x5f9   : > { %3315 = vmatprep.subr.bf16.mxu1 %v3559_v11 }
 0x5fc   : > { %3316 = vmatpush3.bf16.msra.mxu1 %v3437_v13 }
 0x5fd   : > { %3317 = vmatprep.subr.bf16.mxu1 %v3559_v11  ;;  %v3035_v11 = vld [vmem:[%s4257_s6] ss:$0 sm:$0xff] }
 0x600   : > { %3318 = vmatpush3.bf16.msra.mxu1 %v3438_v14 }
 0x683   : > { %v2408_v59 = vpop.xlane.xlu0 %2407 }
 0x684   : > { %v2410_v52 = vmul.f32 0.03125, %v2408_v59 }
 0x686   : > { %v2411_v60 = vsub.f32 %v2403_v58, %v2410_v52 }
 0x688   : > { %v2412_v61 = vmul.f32 %v2411_v60, %v2411_v60 }
 0x68a   : > { %v2413_v62 = vsel %vm1058_vm4, %v2412_v61, 0.0 }
 0x68b   : > { %2414 = vadd.xlane.f32.xlu1 %v2413_v62 }
 0x718   : > { %v2415_v2 = vpop.xlane.xlu1 %2414 }
 0x719   : > { %v2416_v3 = vmul.f32 0.03125, %v2415_v2 }
 0x71b   : > { %v2417_v4 = vadd.f32 1e-05, %v2416_v3 }
 0x71d   : > { %3455 = vrsqrt.f32 %v2417_v4 }
 0x727   : > { %v3456_v5 = vpop.eup %3455 }
 0x728   : > { %v2419_v7 = vmul.f32 %v3456_v5, %v2411_v60 }
 0x72a   : > { %v2426_v9 = vmul.f32 %v3029_v6, %v2419_v7 }
 0x72c   : > { %v2433_v10 = vadd.f32 %v3030_v8, %v2426_v9 }
 0x72e   : > { %v2434_v12 = vpack.c.bf16 %v2433_v10, %v2433_v10 }
 0x730   : > { %3308 = vmatmul.mubr.msk.bf16.vlgmr.msra.gmra.mrb[48].mxu0 %vm1058_vm4, %v2434_v12 }
 0x731   : > { %3324 = vmatpush3.bf16.msra.mxu0 (!%p3043_p1), %v3459_v45  ;;  %3327 = vmatprep.mubr.msk.bf16.mxu0 (!%p3043_p1), %vm3562_vm8, %v3561_v46 }
 0x732   : > { %3325 = vmatprep.subr.bf16.mxu0 (!%p3043_p1), %v3561_v46 }
 0x735   : > { %3326 = vmatpush3.bf16.msra.mxu0 (!%p3043_p1), %v3460_v47 }
 0x803   : > { %v2495_v17 = vpop.f32.mrb[48].mxu0 }
 0x804   : > { %v2496_v18 = vadd.f32 %v3031_v16, %v2495_v17  ;;  %v3309_v19 = vpop.f32.mrb[49].mxu0 }
 0x805   : > { %v2498_v20 = vpop.f32.mrb[50].mxu0 }
 0x806   : > { %v2501_v21 = vmax.f32 %v2496_v18, 0.0  ;;  %v3310_v22 = vpop.f32.mrb[51].mxu0 }
 0x808   : > { %v2502_v23 = vpack.c.bf16 %v2501_v21, %v2501_v21 }
 0x80a   : > { %3320 = vmatmul.mubr.msk.bf16.vlgmr.msra.gmra.mrb[48].mxu1 %vm2542_vm7, %v2502_v23 }
 0x8dd   : > { %v2580_v24 = vpop.f32.mrb[48].mxu1 }
 0x8de   : > { %v2581_v25 = vadd.f32 %v3035_v11, %v2580_v24  ;;  %v3321_v26 = vpop.f32.mrb[49].mxu1 }
 0x8df   : > { %v2583_v27 = vpop.f32.mrb[50].mxu1 }
 0x8e0   : > { %v3322_v28 = vpop.f32.mrb[51].mxu1  ;;  %v2586_v29 = vadd.f32 %v2581_v25, %v2433_v10 }
 0x8e2   : > { %v2589_v30 = vsel %vm1058_vm4, %v2586_v29, 0.0 }
 0x8e3   : > { %2590 = vadd.xlane.f32.xlu0 %v2589_v30 }
 0x970   : > { %v2591_v31 = vpop.xlane.xlu0 %2590 }
 0x971   : > { %v2592_v32 = vmul.f32 0.03125, %v2591_v31 }
 0x973   : > { %v2593_v33 = vsub.f32 %v2586_v29, %v2592_v32 }
 0x975   : > { %v2594_v34 = vmul.f32 %v2593_v33, %v2593_v33 }
 0x977   : > { %v2595_v35 = vsel %vm1058_vm4, %v2594_v34, 0.0 }
 0x978   : > { %2596 = vadd.xlane.f32.xlu1 %v2595_v35 }
 0xa05   : > { %v2597_v36 = vpop.xlane.xlu1 %2596 }
 0xa06   : > { %v2598_v37 = vmul.f32 0.03125, %v2597_v36 }
 0xa08   : > { %v2599_v38 = vadd.f32 1e-05, %v2598_v37 }
 0xa0a   : > { %3457 = vrsqrt.f32 %v2599_v38 }
 0xa14   : > { %v3458_v39 = vpop.eup %3457 }
 0xa15   : > { %v2601_v41 = vmul.f32 %v3458_v39, %v2593_v33  ;;  %2620 = sbr.rel (%p3043_p1) target bundleno = 2819 (0xb03), region = 112 }
 0xa17   : > { %v2608_v43 = vmul.f32 %v3041_v40, %v2601_v41 }
 0xa19   : > { %v2615_v44 = vadd.f32 %v3042_v42, %v2608_v43 }
 0xa1b   : > { %2616 = vst.msk [vmem:[#allocation2] sm:$0xff] %vm1058_vm4, %v2615_v44  ;;  %v2621_v48 = vsel (!%p3043_p1), %vm1058_vm4, %v2615_v44, 0.0 }
 0xa1c   : > { %v2622_v49 = vrot.slane %v2621_v48, 4 }
 0xa1e   : > { %v2623_v50 = vadd.f32 %v2622_v49, %v2621_v48 }
 0xa20   : > { %v2624_v53 = vrot.slane %v2623_v50, 2 }
 0xa22   : > { %v2625_v54 = vadd.f32 %v2624_v53, %v2623_v50 }
 0xa24   : > { %v2626_v55 = vrot.slane %v2625_v54, 1 }
 0xa26   : > { %v2627_v56 = vadd.f32 %v2626_v55, %v2625_v54 }
 0xa28   : > { %v2629_v57 = vmul.f32 0.125, %v2627_v56 }
 0xa2a   : > { %v2630_v58 = vpack.c.bf16 %v2629_v57, %v2629_v57 }
 0xa2c   : > { %3328 = vmatmul.mubr.msk.bf16.vlgmr.msra.gmra.mrb[0].mxu0 %vm1058_vm4, %v2630_v58 }
 0xaff   : > { %v2685_v59 = vpop.f32.mrb[0].mxu0 }
 0xb00   : > { %v2686_v52 = vadd.f32 %v2685_v59, %v2635_v51  ;;  %v3329_v60 = vpop.f32.mrb[1].mxu0 }
 0xb01   : > { %v2688_v61 = vpop.f32.mrb[2].mxu0 }
 0xb02   : > { %2692 = vst.msk [vmem:[%s3832_s22] sm:$0x1] %vm2691_vm9, %v2686_v52  ;;  %v3330_v62 = vpop.f32.mrb[3].mxu0 }
 0xb03 PF: > { %s4263_s28 = sld [smem:[#allocation9_spill]]  ;;  %s4265_s29 = sld [smem:[#allocation36_spill]] }
 0xb04   : > { %s2706_s8 = sshll.u32 %s3832_s22, 4  ;;  %s4267_s21 = sand.u32 1, %s3531_s25   ;;  %s2707_s8 = int_to_ptr.vmem [resolvable:$true] %s2706_s8 }
 0xb05   : > { %s2694_s5 = scalar_lea.sflag [#allocation4], %s4267_s21  ;;  %s3461_s27 = scalar_lea.vmem %s2707_s8, 16 }
 0xb06   : > { %p3462_p2 = scmp.ne.s32.totalorder %s2707_s8, %s3461_s27  ;;  %s3563_s3 = smov [#allocation3]  }
 0xb07   : > { %s3465_s1 = sshll.u32 %s3563_s3, 4  ;;  %s3466_s1 = int_to_ptr.vmem [resolvable:$false] %s3465_s1 }
 0xb08   : > { %p3463_p4 = pnand %p3462_p2, %p3723_p3  ;;  %s3467_s7 = scalar_lea.vmem %s3466_s1, 32 }
 0xb09   : > { %s3047_s4 = sshll.u32 %s4263_s28, 4  ;;  %s4266_s6 = smov %s4265_s29 }
 0xb0a   : > { %s4112_s26 = scalar_lea.hbm %s4265_s29, %s3047_s4  ;;  %p3464_p5 = pneg %p3463_p4 }
 0xb0b   : > { %p3468_p6 = scmp.lt.s32.totalorder %s2707_s8, %s3466_s1  ;;  %p3469_p7 = scmp.lt.s32.totalorder %s3467_s7, %s3461_s27 }
 0xb0d   : > { %p3470_p8 = por %p3469_p7, %p3468_p6 }
 0xb0f   : > { %p3471_p10 = pnand %p3470_p8, %p3464_p5 }
 0xb11   : > { %3474 = shalt.err (!%p3471_p10)
}
 0xb12   : > { %s3475_s22 = scalar_lea.hbm %s4112_s26, 16  ;;  %s3479_s18 = scalar_lea.hbm %s4266_s6, 32 }
 0xb13   : > { %p3476_p11 = scmp.ne.s32.totalorder %s4112_s26, %s3475_s22  ;;  %p3480_p0 = scmp.lt.u32.totalorder %s4112_s26, %s4266_s6 }
 0xb14   : > { %p3481_p1 = scmp.lt.u32.totalorder %s3479_s18, %s3475_s22  ;;  %p3483_p4 = scmp.lt.u32.totalorder %s3475_s22, %s4112_s26 }
 0xb15   : > { %p3477_p12 = pnand %p3476_p11, %p3723_p3 }
 0xb16   : > { %p3482_p2 = por %p3481_p1, %p3480_p0 }
 0xb17   : > { %p3478_p13 = pneg %p3477_p12 }
 0xb18   : > { %p3484_p5 = por %p3483_p4, %p3482_p2 }
 0xb1a   : > { %p3485_p6 = pnand %p3484_p5, %p3478_p13 }
 0xb1c   : > { %3488 = shalt.err (!%p3485_p6)
}
 0xb1d   : > { %3331 = dma.vmem_to_hbm [thread:$0]  (%p3723_p3), %s2707_s8, 16, %s4112_s26, %s2694_s5  }
 0xb1e PF: > { %s4268_s19 = sld [smem:[#allocation12_spill]]  ;;  %s4269_s28 = sld [smem:[#allocation6_spill]] }
 0xb24   : > { %p3337_p7 = scmp.ge.s32.totalorder %s4268_s19, 2  ;;  %s2718_s9 = sand.u32 1, %s4269_s28  }
 0xb25   : > { %s2719_s20 = scalar_lea.sflag [#allocation4], %s2718_s9 }
 0xb26   : > { %p3334_p8 = pnand %p3337_p7, %p3733_p9 }
 0xb28   : > { %3522 = dma.done.wait (!%p3334_p8), %s2719_s20, 16  }
 0xb29   : > { %3524 = vsyncadd (!%p3334_p8), %s2719_s20, 4294967280  ;;  %s34_s0 = sadd.s32 1, %s4268_s19   ;;  %s4271_s29 = sld [smem:[#allocation7_spill]] }
 0xb2a   : > { %p31_p10 = scmp.ge.s32.totalorder %s34_s0, 6   ;;  %s4272_s26 = sld [smem:[#allocation17_spill]] }
 0xb2b   : > { %s4273_s27 = sld [smem:[#allocation10_spill]]  ;;  %s4274_s3 = sld [smem:[#allocation11_spill]] }
 0xb2c   : > { %s4275_s28 = sld [smem:[#allocation13_spill]]  ;;  %s4276_s24 = sld [smem:[#allocation15_spill]] }
 0xb2d   : > { %s4277_s2 = smov %s3531_s25  ;;  %33 = sbr.rel (!%p31_p10) target bundleno = 21 (0x15), region = 195 }
 0xb2f   : > { %s4278_s25 = smov %s4271_s29 }
 0xb32   : > { %s4279_s29 = smov %s4276_s24 }
 0xb34   :  { %2723 = vsyncpa [#allocation4], 1 }
 0xb35   :  { %2725 = vsyncpa [#allocation4 + $0x1], 1 }

</bundles_post_ra>
